<compile_context>
chip_gen: v7x
topology: tpu7x:2x2x1
jax: 0.10.0
libtpu: 0.0.40
codegen_flags: <defaults>
</compile_context>

<pallas_src>
import functools

import jax
import jax.numpy as jnp
from jax import lax
from jax.experimental import pallas as pl
from jax.experimental.pallas import tpu as pltpu

CHUNK = 8  # one sublane tile of timesteps per recurrence block


def _btcnet_kernel(x_ref, w_ih0_ref, w_ih_rest_ref, w_hh_ref, bias_ref,
                   w_eff_t_ref, b_eff_ref, out_ref,
                   seq_buf, gx_buf, *, layer_num):
    T_pad = x_ref.shape[0]
    H = w_hh_ref.shape[1]
    n_chunks = T_pad // CHUNK

    for layer in range(layer_num):
        # Input projection for all timesteps at once (the only throughput matmul).
        if layer == 0:
            gx = jnp.dot(x_ref[...], w_ih0_ref[...],
                         preferred_element_type=jnp.float32)
        else:
            gx = jnp.dot(seq_buf[...], w_ih_rest_ref[layer - 1],
                         preferred_element_type=jnp.float32)
        gx_buf[...] = gx + bias_ref[layer][None, :]

        w_hh = w_hh_ref[layer]  # (H, 4H)

        def chunk_step(ci, carry, w_hh=w_hh):
            h, c = carry  # each (1, H)
            base = pl.multiple_of(ci * CHUNK, CHUNK)
            # One sublane-dense load of this chunk's precomputed gate projections.
            g_chunk = gx_buf[pl.ds(base, CHUNK), :]  # (CHUNK, 4H)
            rows = []
            for j in range(CHUNK):  # Python-unrolled: scheduler sees all 8 steps
                g = g_chunk[j:j + 1, :] + jnp.dot(
                    h, w_hh, preferred_element_type=jnp.float32)  # (1, 4H)
                # Full-vreg activations: one sigmoid + one tanh cover i/f/g/o.
                sg = jax.nn.sigmoid(g)
                tg = jnp.tanh(g)
                i_g = sg[:, 0:H]
                f_g = sg[:, H:2 * H]
                o_g = sg[:, 3 * H:4 * H]
                g_g = tg[:, 2 * H:3 * H]
                c = f_g * c + i_g * g_g
                h = o_g * jnp.tanh(c)
                rows.append(h)
            # One sublane-dense (CHUNK, H) writeback instead of 8 masked stores.
            seq_buf[pl.ds(base, CHUNK), :] = jnp.concatenate(rows, axis=0)
            return (h, c)

        h0 = jnp.zeros((1, H), jnp.float32)
        c0 = jnp.zeros((1, H), jnp.float32)
        lax.fori_loop(0, n_chunks, chunk_step, (h0, c0))

    # Fused lin1∘linear epilogue: (1, T_pad) = w_eff^T (1,H) . seq_buf^T (H,T_pad)
    # Lane-dense output row -> unmasked stores.
    yt = lax.dot_general(
        w_eff_t_ref[...], seq_buf[...],
        dimension_numbers=(((1,), (1,)), ((), ())),
        preferred_element_type=jnp.float32)          # (1, T_pad)
    out_ref[...] = yt + b_eff_ref[...]               # b_eff (1,1) broadcasts


def btcnet_forward(x, params, *, layer_num, h_sz):
    """x: (T, 1, input_sz) float32, returns (T, 1, 1) float32."""
    T, B, input_sz = x.shape
    assert B == 1, "btcnet uses a fixed batch of 1 (h init shape)"

    # Pad T to a multiple of the sublane chunk; padded steps use zero inputs and
    # only affect hidden states *after* the last real timestep (outputs discarded).
    T_pad = ((T + CHUNK - 1) // CHUNK) * CHUNK
    x2d = x.reshape(T, input_sz).astype(jnp.float32)
    if T_pad != T:
        x2d = jnp.concatenate(
            [x2d, jnp.zeros((T_pad - T, input_sz), jnp.float32)], axis=0)

    # Fuse the two output Linear layers offline (exact: composition of linear maps).
    w_eff_t = (params["w1"] @ params["w2"]).T.astype(jnp.float32)          # (1, H)
    b_eff = (params["b1"] @ params["w2"] + params["b2"]).astype(jnp.float32)  # (1, 1)

    kernel = functools.partial(_btcnet_kernel, layer_num=layer_num)
    vmem = pl.BlockSpec(memory_space=pltpu.MemorySpace.VMEM)

    out = pl.pallas_call(
        kernel,
        out_shape=jax.ShapeDtypeStruct((1, T_pad), jnp.float32),
        in_specs=[vmem] * 7,
        out_specs=vmem,
        scratch_shapes=[
            pltpu.VMEM((T_pad, h_sz), jnp.float32),       # per-layer sequence output
            pltpu.VMEM((T_pad, 4 * h_sz), jnp.float32),   # batched gate projections
        ],
    )(x2d,
      params["w_ih0"], params["w_ih_rest"], params["w_hh"], params["bias"],
      w_eff_t, b_eff)
    return out[0, :T].reshape(T, 1, 1)


def init_params(key, input_sz, h_sz, layer_num):
    """Deterministic init matching the PyTorch module's parameter shapes.

    Kernel-side layout (pre-transposed):
      w_ih0:     (input_sz, 4H)
      w_ih_rest: (max(layer_num-1, 1), H, 4H)
      w_hh:      (layer_num, H, 4H)
      bias:      (layer_num, 4H)   (= b_ih + b_hh)
      w1: (H, 100), b1: (1, 100), w2: (100, 1), b2: (1, 1)
    """
    stdv = 1.0 / jnp.sqrt(h_sz)
    keys = jax.random.split(key, 8 + 4 * layer_num)
    ki = iter(range(len(keys)))

    def u(shape, scale):
        return jax.random.uniform(keys[next(ki)], shape, jnp.float32,
                                  minval=-scale, maxval=scale)

    w_ih0 = u((4 * h_sz, input_sz), stdv).T                      # (input_sz, 4H)
    w_ih_rest = []
    w_hh = []
    bias = []
    for layer in range(layer_num):
        if layer > 0:
            w_ih_rest.append(u((4 * h_sz, h_sz), stdv).T)        # (H, 4H)
        w_hh.append(u((4 * h_sz, h_sz), stdv).T)                 # (H, 4H)
        b_ih = u((4 * h_sz,), stdv)
        b_hh = u((4 * h_sz,), stdv)
        bias.append(b_ih + b_hh)
    if not w_ih_rest:  # keep a non-empty dummy so shapes stay static
        w_ih_rest.append(jnp.zeros((h_sz, 4 * h_sz), jnp.float32))

    lin1_s = 1.0 / jnp.sqrt(h_sz)
    lin2_s = 1.0 / jnp.sqrt(100.0)
    w1 = u((100, h_sz), lin1_s).T                                # (H, 100)
    b1 = u((100,), lin1_s).reshape(1, 100)
    w2 = u((1, 100), lin2_s).T                                   # (100, 1)
    b2 = u((1,), lin2_s).reshape(1, 1)

    return {
        "w_ih0": w_ih0,
        "w_ih_rest": jnp.stack(w_ih_rest, axis=0),
        "w_hh": jnp.stack(w_hh, axis=0),
        "bias": jnp.stack(bias, axis=0),
        "w1": w1, "b1": b1, "w2": w2, "b2": b2,
    }


def btcnet_reference(x, params, *, layer_num, h_sz):
    """Pure-JAX reference of the same math (unfused linears, for validation)."""
    T, B, input_sz = x.shape
    layer_in = x.reshape(T, input_sz).astype(jnp.float32)
    H = h_sz
    for layer in range(layer_num):
        w_ih = params["w_ih0"] if layer == 0 else params["w_ih_rest"][layer - 1]
        w_hh = params["w_hh"][layer]
        b = params["bias"][layer]
        h = jnp.zeros((1, H), jnp.float32)
        c = jnp.zeros((1, H), jnp.float32)
        outs = []
        for t in range(T):
            g = layer_in[t:t + 1] @ w_ih + h @ w_hh + b[None, :]
            i = jax.nn.sigmoid(g[:, 0:H])
            f = jax.nn.sigmoid(g[:, H:2 * H])
            gg = jnp.tanh(g[:, 2 * H:3 * H])
            o = jax.nn.sigmoid(g[:, 3 * H:4 * H])
            c = f * c + i * gg
            h = o * jnp.tanh(c)
            outs.append(h)
        layer_in = jnp.concatenate(outs, axis=0)
    y = layer_in @ params["w1"] + params["b1"]
    y = y @ params["w2"] + params["b2"]
    return y.reshape(T, 1, 1)


if __name__ == "__main__":
    input_sz = 32
    h_sz = 32
    layer_num = 2
    seq_len = 8

    key = jax.random.PRNGKey(0)
    k_x, k_p = jax.random.split(key)
    x = jax.random.normal(k_x, (seq_len, 1, input_sz), jnp.float32)
    params = init_params(k_p, input_sz, h_sz, layer_num)

    out = btcnet_forward(x, params, layer_num=layer_num, h_sz=h_sz)
    out = jax.block_until_ready(out)

    ref = btcnet_reference(x, params, layer_num=layer_num, h_sz=h_sz)
    assert out.shape == (seq_len, 1, 1)
    assert jnp.allclose(out, ref, atol=1e-4, rtol=1e-4), (out, ref)

    print("KERNEL_OK")
</pallas_src>

<mosaic_0001>
module attributes {stable_mosaic.version = 11 : i64} {
  func.func @_btcnet_kernel(%arg0: memref<8x32xf32, #tpu.memory_space<vmem>>, %arg1: memref<32x128xf32, #tpu.memory_space<vmem>>, %arg2: memref<1x32x128xf32, #tpu.memory_space<vmem>>, %arg3: memref<2x32x128xf32, #tpu.memory_space<vmem>>, %arg4: memref<2x128xf32, #tpu.memory_space<vmem>>, %arg5: memref<1x32xf32, #tpu.memory_space<vmem>>, %arg6: memref<1x1xf32, #tpu.memory_space<vmem>>, %arg7: memref<1x8xf32, #tpu.memory_space<vmem>>, %arg8: memref<8x32xf32, #tpu.memory_space<vmem>>, %arg9: memref<8x128xf32, #tpu.memory_space<vmem>>) attributes {dimension_semantics = [], scalar_prefetch = 0 : i64, scratch_operands = 2 : i64, tpu.core_type = #tpu.core_type<tc>} {
    %c0 = arith.constant 0 : index
    %c0_0 = arith.constant 0 : index
    %0 = vector.load %arg0[%c0, %c0_0] : memref<8x32xf32, #tpu.memory_space<vmem>>, vector<8x32xf32>
    %c0_1 = arith.constant 0 : index
    %c0_2 = arith.constant 0 : index
    %1 = vector.load %arg1[%c0_1, %c0_2] : memref<32x128xf32, #tpu.memory_space<vmem>>, vector<32x128xf32>
    %cst = arith.constant dense<0.000000e+00> : vector<8x128xf32>
    %2 = tpu.matmul %0, %1, %cst {dimension_numbers = #tpu.dot_dimension_numbers<[1], [0], [0], [1], [0, 0, 1, 1], [], []>} : vector<8x32xf32>, vector<32x128xf32>, vector<8x128xf32> -> vector<8x128xf32>
    %c0_3 = arith.constant 0 : index
    %c0_4 = arith.constant 0 : index
    %3 = vector.load %arg4[%c0_3, %c0_4] : memref<2x128xf32, #tpu.memory_space<vmem>>, vector<1x128xf32>
    %4 = vector.shape_cast %3 : vector<1x128xf32> to vector<128xf32>
    %5 = vector.shape_cast %4 : vector<128xf32> to vector<1x128xf32>
    %6 = vector.broadcast %5 : vector<1x128xf32> to vector<8x128xf32>
    %7 = arith.addf %2, %6 : vector<8x128xf32>
    %c0_5 = arith.constant 0 : index
    %c0_6 = arith.constant 0 : index
    %8 = vector.load %arg9[%c0_5, %c0_6] : memref<8x128xf32, #tpu.memory_space<vmem>>, vector<8x128xf32>
    tpu.vector_store %arg9[%c0_5, %c0_6], %7 {strides = array<i32>} : memref<8x128xf32, #tpu.memory_space<vmem>>, vector<8x128xf32>,
    %c0_7 = arith.constant 0 : index
    %c0_8 = arith.constant 0 : index
    %c0_9 = arith.constant 0 : index
    %9 = vector.load %arg3[%c0_7, %c0_8, %c0_9] : memref<2x32x128xf32, #tpu.memory_space<vmem>>, vector<1x32x128xf32>
    %10 = vector.shape_cast %9 : vector<1x32x128xf32> to vector<32x128xf32>
    %cst_10 = arith.constant 0.000000e+00 : f32
    %11 = vector.broadcast %cst_10 : f32 to vector<1x32xf32>
    %cst_11 = arith.constant 0.000000e+00 : f32
    %12 = vector.broadcast %cst_11 : f32 to vector<1x32xf32>
    %c0_i32 = arith.constant 0 : i32
    %c8_i32 = arith.constant 8 : i32
    %13 = arith.muli %c0_i32, %c8_i32 : i32
    %14 = tpu.assume_multiple %13, 8 : i32
    %15 = arith.index_cast %14 : i32 to index
    %c0_12 = arith.constant 0 : index
    %16 = vector.load %arg9[%15, %c0_12] : memref<8x128xf32, #tpu.memory_space<vmem>>, vector<8x128xf32>
    %17 = vector.extract_strided_slice %16 {offsets = [0, 0], sizes = [1, 128], strides = [1, 1]} : vector<8x128xf32> to vector<1x128xf32>
    %cst_13 = arith.constant dense<0.000000e+00> : vector<1x128xf32>
    %18 = tpu.matmul %11, %10, %cst_13 {dimension_numbers = #tpu.dot_dimension_numbers<[1], [0], [0], [1], [0, 0, 1, 1], [], []>} : vector<1x32xf32>, vector<32x128xf32>, vector<1x128xf32> -> vector<1x128xf32>
    %19 = arith.addf %17, %18 : vector<1x128xf32>
    %20 = arith.negf %19 : vector<1x128xf32>
    %21 = math.exp %20 : vector<1x128xf32>
    %cst_14 = arith.constant 1.000000e+00 : f32
    %22 = vector.broadcast %cst_14 : f32 to vector<1x128xf32>
    %23 = arith.addf %22, %21 : vector<1x128xf32>
    %24 = arith.divf %22, %23 : vector<1x128xf32>
    %25 = math.tanh %19 : vector<1x128xf32>
    %26 = vector.extract_strided_slice %24 {offsets = [0, 0], sizes = [1, 32], strides = [1, 1]} : vector<1x128xf32> to vector<1x32xf32>
    %27 = vector.extract_strided_slice %24 {offsets = [0, 32], sizes = [1, 32], strides = [1, 1]} : vector<1x128xf32> to vector<1x32xf32>
    %28 = vector.extract_strided_slice %24 {offsets = [0, 96], sizes = [1, 32], strides = [1, 1]} : vector<1x128xf32> to vector<1x32xf32>
    %29 = vector.extract_strided_slice %25 {offsets = [0, 64], sizes = [1, 32], strides = [1, 1]} : vector<1x128xf32> to vector<1x32xf32>
    %30 = arith.mulf %27, %12 : vector<1x32xf32>
    %31 = arith.mulf %26, %29 : vector<1x32xf32>
    %32 = arith.addf %30, %31 : vector<1x32xf32>
    %33 = math.tanh %32 : vector<1x32xf32>
    %34 = arith.mulf %28, %33 : vector<1x32xf32>
    %35 = vector.extract_strided_slice %16 {offsets = [1, 0], sizes = [1, 128], strides = [1, 1]} : vector<8x128xf32> to vector<1x128xf32>
    %cst_15 = arith.constant dense<0.000000e+00> : vector<1x128xf32>
    %36 = tpu.matmul %34, %10, %cst_15 {dimension_numbers = #tpu.dot_dimension_numbers<[1], [0], [0], [1], [0, 0, 1, 1], [], []>} : vector<1x32xf32>, vector<32x128xf32>, vector<1x128xf32> -> vector<1x128xf32>
    %37 = arith.addf %35, %36 : vector<1x128xf32>
    %38 = arith.negf %37 : vector<1x128xf32>
    %39 = math.exp %38 : vector<1x128xf32>
    %cst_16 = arith.constant 1.000000e+00 : f32
    %40 = vector.broadcast %cst_16 : f32 to vector<1x128xf32>
    %41 = arith.addf %40, %39 : vector<1x128xf32>
    %42 = arith.divf %40, %41 : vector<1x128xf32>
    %43 = math.tanh %37 : vector<1x128xf32>
    %44 = vector.extract_strided_slice %42 {offsets = [0, 0], sizes = [1, 32], strides = [1, 1]} : vector<1x128xf32> to vector<1x32xf32>
    %45 = vector.extract_strided_slice %42 {offsets = [0, 32], sizes = [1, 32], strides = [1, 1]} : vector<1x128xf32> to vector<1x32xf32>
    %46 = vector.extract_strided_slice %42 {offsets = [0, 96], sizes = [1, 32], strides = [1, 1]} : vector<1x128xf32> to vector<1x32xf32>
    %47 = vector.extract_strided_slice %43 {offsets = [0, 64], sizes = [1, 32], strides = [1, 1]} : vector<1x128xf32> to vector<1x32xf32>
    %48 = arith.mulf %45, %32 : vector<1x32xf32>
    %49 = arith.mulf %44, %47 : vector<1x32xf32>
    %50 = arith.addf %48, %49 : vector<1x32xf32>
    %51 = math.tanh %50 : vector<1x32xf32>
    %52 = arith.mulf %46, %51 : vector<1x32xf32>
    %53 = vector.extract_strided_slice %16 {offsets = [2, 0], sizes = [1, 128], strides = [1, 1]} : vector<8x128xf32> to vector<1x128xf32>
    %cst_17 = arith.constant dense<0.000000e+00> : vector<1x128xf32>
    %54 = tpu.matmul %52, %10, %cst_17 {dimension_numbers = #tpu.dot_dimension_numbers<[1], [0], [0], [1], [0, 0, 1, 1], [], []>} : vector<1x32xf32>, vector<32x128xf32>, vector<1x128xf32> -> vector<1x128xf32>
    %55 = arith.addf %53, %54 : vector<1x128xf32>
    %56 = arith.negf %55 : vector<1x128xf32>
    %57 = math.exp %56 : vector<1x128xf32>
    %cst_18 = arith.constant 1.000000e+00 : f32
    %58 = vector.broadcast %cst_18 : f32 to vector<1x128xf32>
    %59 = arith.addf %58, %57 : vector<1x128xf32>
    %60 = arith.divf %58, %59 : vector<1x128xf32>
    %61 = math.tanh %55 : vector<1x128xf32>
    %62 = vector.extract_strided_slice %60 {offsets = [0, 0], sizes = [1, 32], strides = [1, 1]} : vector<1x128xf32> to vector<1x32xf32>
    %63 = vector.extract_strided_slice %60 {offsets = [0, 32], sizes = [1, 32], strides = [1, 1]} : vector<1x128xf32> to vector<1x32xf32>
    %64 = vector.extract_strided_slice %60 {offsets = [0, 96], sizes = [1, 32], strides = [1, 1]} : vector<1x128xf32> to vector<1x32xf32>
    %65 = vector.extract_strided_slice %61 {offsets = [0, 64], sizes = [1, 32], strides = [1, 1]} : vector<1x128xf32> to vector<1x32xf32>
    %66 = arith.mulf %63, %50 : vector<1x32xf32>
    %67 = arith.mulf %62, %65 : vector<1x32xf32>
    %68 = arith.addf %66, %67 : vector<1x32xf32>
    %69 = math.tanh %68 : vector<1x32xf32>
    %70 = arith.mulf %64, %69 : vector<1x32xf32>
    %71 = vector.extract_strided_slice %16 {offsets = [3, 0], sizes = [1, 128], strides = [1, 1]} : vector<8x128xf32> to vector<1x128xf32>
    %cst_19 = arith.constant dense<0.000000e+00> : vector<1x128xf32>
    %72 = tpu.matmul %70, %10, %cst_19 {dimension_numbers = #tpu.dot_dimension_numbers<[1], [0], [0], [1], [0, 0, 1, 1], [], []>} : vector<1x32xf32>, vector<32x128xf32>, vector<1x128xf32> -> vector<1x128xf32>
    %73 = arith.addf %71, %72 : vector<1x128xf32>
    %74 = arith.negf %73 : vector<1x128xf32>
    %75 = math.exp %74 : vector<1x128xf32>
    %cst_20 = arith.constant 1.000000e+00 : f32
    %76 = vector.broadcast %cst_20 : f32 to vector<1x128xf32>
    %77 = arith.addf %76, %75 : vector<1x128xf32>
    %78 = arith.divf %76, %77 : vector<1x128xf32>
    %79 = math.tanh %73 : vector<1x128xf32>
    %80 = vector.extract_strided_slice %78 {offsets = [0, 0], sizes = [1, 32], strides = [1, 1]} : vector<1x128xf32> to vector<1x32xf32>
    %81 = vector.extract_strided_slice %78 {offsets = [0, 32], sizes = [1, 32], strides = [1, 1]} : vector<1x128xf32> to vector<1x32xf32>
    %82 = vector.extract_strided_slice %78 {offsets = [0, 96], sizes = [1, 32], strides = [1, 1]} : vector<1x128xf32> to vector<1x32xf32>
    %83 = vector.extract_strided_slice %79 {offsets = [0, 64], sizes = [1, 32], strides = [1, 1]} : vector<1x128xf32> to vector<1x32xf32>
    %84 = arith.mulf %81, %68 : vector<1x32xf32>
    %85 = arith.mulf %80, %83 : vector<1x32xf32>
    %86 = arith.addf %84, %85 : vector<1x32xf32>
    %87 = math.tanh %86 : vector<1x32xf32>
    %88 = arith.mulf %82, %87 : vector<1x32xf32>
    %89 = vector.extract_strided_slice %16 {offsets = [4, 0], sizes = [1, 128], strides = [1, 1]} : vector<8x128xf32> to vector<1x128xf32>
    %cst_21 = arith.constant dense<0.000000e+00> : vector<1x128xf32>
    %90 = tpu.matmul %88, %10, %cst_21 {dimension_numbers = #tpu.dot_dimension_numbers<[1], [0], [0], [1], [0, 0, 1, 1], [], []>} : vector<1x32xf32>, vector<32x128xf32>, vector<1x128xf32> -> vector<1x128xf32>
    %91 = arith.addf %89, %90 : vector<1x128xf32>
    %92 = arith.negf %91 : vector<1x128xf32>
    %93 = math.exp %92 : vector<1x128xf32>
    %cst_22 = arith.constant 1.000000e+00 : f32
    %94 = vector.broadcast %cst_22 : f32 to vector<1x128xf32>
    %95 = arith.addf %94, %93 : vector<1x128xf32>
    %96 = arith.divf %94, %95 : vector<1x128xf32>
    %97 = math.tanh %91 : vector<1x128xf32>
    %98 = vector.extract_strided_slice %96 {offsets = [0, 0], sizes = [1, 32], strides = [1, 1]} : vector<1x128xf32> to vector<1x32xf32>
    %99 = vector.extract_strided_slice %96 {offsets = [0, 32], sizes = [1, 32], strides = [1, 1]} : vector<1x128xf32> to vector<1x32xf32>
    %100 = vector.extract_strided_slice %96 {offsets = [0, 96], sizes = [1, 32], strides = [1, 1]} : vector<1x128xf32> to vector<1x32xf32>
    %101 = vector.extract_strided_slice %97 {offsets = [0, 64], sizes = [1, 32], strides = [1, 1]} : vector<1x128xf32> to vector<1x32xf32>
    %102 = arith.mulf %99, %86 : vector<1x32xf32>
    %103 = arith.mulf %98, %101 : vector<1x32xf32>
    %104 = arith.addf %102, %103 : vector<1x32xf32>
    %105 = math.tanh %104 : vector<1x32xf32>
    %106 = arith.mulf %100, %105 : vector<1x32xf32>
    %107 = vector.extract_strided_slice %16 {offsets = [5, 0], sizes = [1, 128], strides = [1, 1]} : vector<8x128xf32> to vector<1x128xf32>
    %cst_23 = arith.constant dense<0.000000e+00> : vector<1x128xf32>
    %108 = tpu.matmul %106, %10, %cst_23 {dimension_numbers = #tpu.dot_dimension_numbers<[1], [0], [0], [1], [0, 0, 1, 1], [], []>} : vector<1x32xf32>, vector<32x128xf32>, vector<1x128xf32> -> vector<1x128xf32>
    %109 = arith.addf %107, %108 : vector<1x128xf32>
    %110 = arith.negf %109 : vector<1x128xf32>
    %111 = math.exp %110 : vector<1x128xf32>
    %cst_24 = arith.constant 1.000000e+00 : f32
    %112 = vector.broadcast %cst_24 : f32 to vector<1x128xf32>
    %113 = arith.addf %112, %111 : vector<1x128xf32>
    %114 = arith.divf %112, %113 : vector<1x128xf32>
    %115 = math.tanh %109 : vector<1x128xf32>
    %116 = vector.extract_strided_slice %114 {offsets = [0, 0], sizes = [1, 32], strides = [1, 1]} : vector<1x128xf32> to vector<1x32xf32>
    %117 = vector.extract_strided_slice %114 {offsets = [0, 32], sizes = [1, 32], strides = [1, 1]} : vector<1x128xf32> to vector<1x32xf32>
    %118 = vector.extract_strided_slice %114 {offsets = [0, 96], sizes = [1, 32], strides = [1, 1]} : vector<1x128xf32> to vector<1x32xf32>
    %119 = vector.extract_strided_slice %115 {offsets = [0, 64], sizes = [1, 32], strides = [1, 1]} : vector<1x128xf32> to vector<1x32xf32>
    %120 = arith.mulf %117, %104 : vector<1x32xf32>
    %121 = arith.mulf %116, %119 : vector<1x32xf32>
    %122 = arith.addf %120, %121 : vector<1x32xf32>
    %123 = math.tanh %122 : vector<1x32xf32>
    %124 = arith.mulf %118, %123 : vector<1x32xf32>
    %125 = vector.extract_strided_slice %16 {offsets = [6, 0], sizes = [1, 128], strides = [1, 1]} : vector<8x128xf32> to vector<1x128xf32>
    %cst_25 = arith.constant dense<0.000000e+00> : vector<1x128xf32>
    %126 = tpu.matmul %124, %10, %cst_25 {dimension_numbers = #tpu.dot_dimension_numbers<[1], [0], [0], [1], [0, 0, 1, 1], [], []>} : vector<1x32xf32>, vector<32x128xf32>, vector<1x128xf32> -> vector<1x128xf32>
    %127 = arith.addf %125, %126 : vector<1x128xf32>
    %128 = arith.negf %127 : vector<1x128xf32>
    %129 = math.exp %128 : vector<1x128xf32>
    %cst_26 = arith.constant 1.000000e+00 : f32
    %130 = vector.broadcast %cst_26 : f32 to vector<1x128xf32>
    %131 = arith.addf %130, %129 : vector<1x128xf32>
    %132 = arith.divf %130, %131 : vector<1x128xf32>
    %133 = math.tanh %127 : vector<1x128xf32>
    %134 = vector.extract_strided_slice %132 {offsets = [0, 0], sizes = [1, 32], strides = [1, 1]} : vector<1x128xf32> to vector<1x32xf32>
    %135 = vector.extract_strided_slice %132 {offsets = [0, 32], sizes = [1, 32], strides = [1, 1]} : vector<1x128xf32> to vector<1x32xf32>
    %136 = vector.extract_strided_slice %132 {offsets = [0, 96], sizes = [1, 32], strides = [1, 1]} : vector<1x128xf32> to vector<1x32xf32>
    %137 = vector.extract_strided_slice %133 {offsets = [0, 64], sizes = [1, 32], strides = [1, 1]} : vector<1x128xf32> to vector<1x32xf32>
    %138 = arith.mulf %135, %122 : vector<1x32xf32>
    %139 = arith.mulf %134, %137 : vector<1x32xf32>
    %140 = arith.addf %138, %139 : vector<1x32xf32>
    %141 = math.tanh %140 : vector<1x32xf32>
    %142 = arith.mulf %136, %141 : vector<1x32xf32>
    %143 = vector.extract_strided_slice %16 {offsets = [7, 0], sizes = [1, 128], strides = [1, 1]} : vector<8x128xf32> to vector<1x128xf32>
    %cst_27 = arith.constant dense<0.000000e+00> : vector<1x128xf32>
    %144 = tpu.matmul %142, %10, %cst_27 {dimension_numbers = #tpu.dot_dimension_numbers<[1], [0], [0], [1], [0, 0, 1, 1], [], []>} : vector<1x32xf32>, vector<32x128xf32>, vector<1x128xf32> -> vector<1x128xf32>
    %145 = arith.addf %143, %144 : vector<1x128xf32>
    %146 = arith.negf %145 : vector<1x128xf32>
    %147 = math.exp %146 : vector<1x128xf32>
    %cst_28 = arith.constant 1.000000e+00 : f32
    %148 = vector.broadcast %cst_28 : f32 to vector<1x128xf32>
    %149 = arith.addf %148, %147 : vector<1x128xf32>
    %150 = arith.divf %148, %149 : vector<1x128xf32>
    %151 = math.tanh %145 : vector<1x128xf32>
    %152 = vector.extract_strided_slice %150 {offsets = [0, 0], sizes = [1, 32], strides = [1, 1]} : vector<1x128xf32> to vector<1x32xf32>
    %153 = vector.extract_strided_slice %150 {offsets = [0, 32], sizes = [1, 32], strides = [1, 1]} : vector<1x128xf32> to vector<1x32xf32>
    %154 = vector.extract_strided_slice %150 {offsets = [0, 96], sizes = [1, 32], strides = [1, 1]} : vector<1x128xf32> to vector<1x32xf32>
    %155 = vector.extract_strided_slice %151 {offsets = [0, 64], sizes = [1, 32], strides = [1, 1]} : vector<1x128xf32> to vector<1x32xf32>
    %156 = arith.mulf %153, %140 : vector<1x32xf32>
    %157 = arith.mulf %152, %155 : vector<1x32xf32>
    %158 = arith.addf %156, %157 : vector<1x32xf32>
    %159 = math.tanh %158 : vector<1x32xf32>
    %160 = arith.mulf %154, %159 : vector<1x32xf32>
    %161 = tpu.concatenate %34, %52, %70, %88, %106, %124, %142, %160 in 0 : vector<1x32xf32>, vector<1x32xf32>, vector<1x32xf32>, vector<1x32xf32>, vector<1x32xf32>, vector<1x32xf32>, vector<1x32xf32>, vector<1x32xf32> -> vector<8x32xf32>
    %162 = arith.index_cast %14 : i32 to index
    %c0_29 = arith.constant 0 : index
    %163 = vector.load %arg8[%162, %c0_29] : memref<8x32xf32, #tpu.memory_space<vmem>>, vector<8x32xf32>
    tpu.vector_store %arg8[%162, %c0_29], %161 {strides = array<i32>} : memref<8x32xf32, #tpu.memory_space<vmem>>, vector<8x32xf32>,
    %c1_i32 = arith.constant 1 : i32
    %c0_30 = arith.constant 0 : index
    %c0_31 = arith.constant 0 : index
    %164 = vector.load %arg8[%c0_30, %c0_31] : memref<8x32xf32, #tpu.memory_space<vmem>>, vector<8x32xf32>
    %c0_32 = arith.constant 0 : index
    %c0_33 = arith.constant 0 : index
    %c0_34 = arith.constant 0 : index
    %165 = vector.load %arg2[%c0_32, %c0_33, %c0_34] : memref<1x32x128xf32, #tpu.memory_space<vmem>>, vector<1x32x128xf32>
    %166 = vector.shape_cast %165 : vector<1x32x128xf32> to vector<32x128xf32>
    %cst_35 = arith.constant dense<0.000000e+00> : vector<8x128xf32>
    %167 = tpu.matmul %164, %166, %cst_35 {dimension_numbers = #tpu.dot_dimension_numbers<[1], [0], [0], [1], [0, 0, 1, 1], [], []>} : vector<8x32xf32>, vector<32x128xf32>, vector<8x128xf32> -> vector<8x128xf32>
    %c1 = arith.constant 1 : index
    %c0_36 = arith.constant 0 : index
    %168 = vector.load %arg4[%c1, %c0_36] : memref<2x128xf32, #tpu.memory_space<vmem>>, vector<1x128xf32>
    %169 = vector.shape_cast %168 : vector<1x128xf32> to vector<128xf32>
    %170 = vector.shape_cast %169 : vector<128xf32> to vector<1x128xf32>
    %171 = vector.broadcast %170 : vector<1x128xf32> to vector<8x128xf32>
    %172 = arith.addf %167, %171 : vector<8x128xf32>
    %c0_37 = arith.constant 0 : index
    %c0_38 = arith.constant 0 : index
    %173 = vector.load %arg9[%c0_37, %c0_38] : memref<8x128xf32, #tpu.memory_space<vmem>>, vector<8x128xf32>
    tpu.vector_store %arg9[%c0_37, %c0_38], %172 {strides = array<i32>} : memref<8x128xf32, #tpu.memory_space<vmem>>, vector<8x128xf32>,
    %c1_39 = arith.constant 1 : index
    %c0_40 = arith.constant 0 : index
    %c0_41 = arith.constant 0 : index
    %174 = vector.load %arg3[%c1_39, %c0_40, %c0_41] : memref<2x32x128xf32, #tpu.memory_space<vmem>>, vector<1x32x128xf32>
    %175 = vector.shape_cast %174 : vector<1x32x128xf32> to vector<32x128xf32>
    %cst_42 = arith.constant 0.000000e+00 : f32
    %176 = vector.broadcast %cst_42 : f32 to vector<1x32xf32>
    %cst_43 = arith.constant 0.000000e+00 : f32
    %177 = vector.broadcast %cst_43 : f32 to vector<1x32xf32>
    %c0_i32_44 = arith.constant 0 : i32
    %c8_i32_45 = arith.constant 8 : i32
    %178 = arith.muli %c0_i32_44, %c8_i32_45 : i32
    %179 = tpu.assume_multiple %178, 8 : i32
    %180 = arith.index_cast %179 : i32 to index
    %c0_46 = arith.constant 0 : index
    %181 = vector.load %arg9[%180, %c0_46] : memref<8x128xf32, #tpu.memory_space<vmem>>, vector<8x128xf32>
    %182 = vector.extract_strided_slice %181 {offsets = [0, 0], sizes = [1, 128], strides = [1, 1]} : vector<8x128xf32> to vector<1x128xf32>
    %cst_47 = arith.constant dense<0.000000e+00> : vector<1x128xf32>
    %183 = tpu.matmul %176, %175, %cst_47 {dimension_numbers = #tpu.dot_dimension_numbers<[1], [0], [0], [1], [0, 0, 1, 1], [], []>} : vector<1x32xf32>, vector<32x128xf32>, vector<1x128xf32> -> vector<1x128xf32>
    %184 = arith.addf %182, %183 : vector<1x128xf32>
    %185 = arith.negf %184 : vector<1x128xf32>
    %186 = math.exp %185 : vector<1x128xf32>
    %cst_48 = arith.constant 1.000000e+00 : f32
    %187 = vector.broadcast %cst_48 : f32 to vector<1x128xf32>
    %188 = arith.addf %187, %186 : vector<1x128xf32>
    %189 = arith.divf %187, %188 : vector<1x128xf32>
    %190 = math.tanh %184 : vector<1x128xf32>
    %191 = vector.extract_strided_slice %189 {offsets = [0, 0], sizes = [1, 32], strides = [1, 1]} : vector<1x128xf32> to vector<1x32xf32>
    %192 = vector.extract_strided_slice %189 {offsets = [0, 32], sizes = [1, 32], strides = [1, 1]} : vector<1x128xf32> to vector<1x32xf32>
    %193 = vector.extract_strided_slice %189 {offsets = [0, 96], sizes = [1, 32], strides = [1, 1]} : vector<1x128xf32> to vector<1x32xf32>
    %194 = vector.extract_strided_slice %190 {offsets = [0, 64], sizes = [1, 32], strides = [1, 1]} : vector<1x128xf32> to vector<1x32xf32>
    %195 = arith.mulf %192, %177 : vector<1x32xf32>
    %196 = arith.mulf %191, %194 : vector<1x32xf32>
    %197 = arith.addf %195, %196 : vector<1x32xf32>
    %198 = math.tanh %197 : vector<1x32xf32>
    %199 = arith.mulf %193, %198 : vector<1x32xf32>
    %200 = vector.extract_strided_slice %181 {offsets = [1, 0], sizes = [1, 128], strides = [1, 1]} : vector<8x128xf32> to vector<1x128xf32>
    %cst_49 = arith.constant dense<0.000000e+00> : vector<1x128xf32>
    %201 = tpu.matmul %199, %175, %cst_49 {dimension_numbers = #tpu.dot_dimension_numbers<[1], [0], [0], [1], [0, 0, 1, 1], [], []>} : vector<1x32xf32>, vector<32x128xf32>, vector<1x128xf32> -> vector<1x128xf32>
    %202 = arith.addf %200, %201 : vector<1x128xf32>
    %203 = arith.negf %202 : vector<1x128xf32>
    %204 = math.exp %203 : vector<1x128xf32>
    %cst_50 = arith.constant 1.000000e+00 : f32
    %205 = vector.broadcast %cst_50 : f32 to vector<1x128xf32>
    %206 = arith.addf %205, %204 : vector<1x128xf32>
    %207 = arith.divf %205, %206 : vector<1x128xf32>
    %208 = math.tanh %202 : vector<1x128xf32>
    %209 = vector.extract_strided_slice %207 {offsets = [0, 0], sizes = [1, 32], strides = [1, 1]} : vector<1x128xf32> to vector<1x32xf32>
    %210 = vector.extract_strided_slice %207 {offsets = [0, 32], sizes = [1, 32], strides = [1, 1]} : vector<1x128xf32> to vector<1x32xf32>
    %211 = vector.extract_strided_slice %207 {offsets = [0, 96], sizes = [1, 32], strides = [1, 1]} : vector<1x128xf32> to vector<1x32xf32>
    %212 = vector.extract_strided_slice %208 {offsets = [0, 64], sizes = [1, 32], strides = [1, 1]} : vector<1x128xf32> to vector<1x32xf32>
    %213 = arith.mulf %210, %197 : vector<1x32xf32>
    %214 = arith.mulf %209, %212 : vector<1x32xf32>
    %215 = arith.addf %213, %214 : vector<1x32xf32>
    %216 = math.tanh %215 : vector<1x32xf32>
    %217 = arith.mulf %211, %216 : vector<1x32xf32>
    %218 = vector.extract_strided_slice %181 {offsets = [2, 0], sizes = [1, 128], strides = [1, 1]} : vector<8x128xf32> to vector<1x128xf32>
    %cst_51 = arith.constant dense<0.000000e+00> : vector<1x128xf32>
    %219 = tpu.matmul %217, %175, %cst_51 {dimension_numbers = #tpu.dot_dimension_numbers<[1], [0], [0], [1], [0, 0, 1, 1], [], []>} : vector<1x32xf32>, vector<32x128xf32>, vector<1x128xf32> -> vector<1x128xf32>
    %220 = arith.addf %218, %219 : vector<1x128xf32>
    %221 = arith.negf %220 : vector<1x128xf32>
    %222 = math.exp %221 : vector<1x128xf32>
    %cst_52 = arith.constant 1.000000e+00 : f32
    %223 = vector.broadcast %cst_52 : f32 to vector<1x128xf32>
    %224 = arith.addf %223, %222 : vector<1x128xf32>
    %225 = arith.divf %223, %224 : vector<1x128xf32>
    %226 = math.tanh %220 : vector<1x128xf32>
    %227 = vector.extract_strided_slice %225 {offsets = [0, 0], sizes = [1, 32], strides = [1, 1]} : vector<1x128xf32> to vector<1x32xf32>
    %228 = vector.extract_strided_slice %225 {offsets = [0, 32], sizes = [1, 32], strides = [1, 1]} : vector<1x128xf32> to vector<1x32xf32>
    %229 = vector.extract_strided_slice %225 {offsets = [0, 96], sizes = [1, 32], strides = [1, 1]} : vector<1x128xf32> to vector<1x32xf32>
    %230 = vector.extract_strided_slice %226 {offsets = [0, 64], sizes = [1, 32], strides = [1, 1]} : vector<1x128xf32> to vector<1x32xf32>
    %231 = arith.mulf %228, %215 : vector<1x32xf32>
    %232 = arith.mulf %227, %230 : vector<1x32xf32>
    %233 = arith.addf %231, %232 : vector<1x32xf32>
    %234 = math.tanh %233 : vector<1x32xf32>
    %235 = arith.mulf %229, %234 : vector<1x32xf32>
    %236 = vector.extract_strided_slice %181 {offsets = [3, 0], sizes = [1, 128], strides = [1, 1]} : vector<8x128xf32> to vector<1x128xf32>
    %cst_53 = arith.constant dense<0.000000e+00> : vector<1x128xf32>
    %237 = tpu.matmul %235, %175, %cst_53 {dimension_numbers = #tpu.dot_dimension_numbers<[1], [0], [0], [1], [0, 0, 1, 1], [], []>} : vector<1x32xf32>, vector<32x128xf32>, vector<1x128xf32> -> vector<1x128xf32>
    %238 = arith.addf %236, %237 : vector<1x128xf32>
    %239 = arith.negf %238 : vector<1x128xf32>
    %240 = math.exp %239 : vector<1x128xf32>
    %cst_54 = arith.constant 1.000000e+00 : f32
    %241 = vector.broadcast %cst_54 : f32 to vector<1x128xf32>
    %242 = arith.addf %241, %240 : vector<1x128xf32>
    %243 = arith.divf %241, %242 : vector<1x128xf32>
    %244 = math.tanh %238 : vector<1x128xf32>
    %245 = vector.extract_strided_slice %243 {offsets = [0, 0], sizes = [1, 32], strides = [1, 1]} : vector<1x128xf32> to vector<1x32xf32>
    %246 = vector.extract_strided_slice %243 {offsets = [0, 32], sizes = [1, 32], strides = [1, 1]} : vector<1x128xf32> to vector<1x32xf32>
    %247 = vector.extract_strided_slice %243 {offsets = [0, 96], sizes = [1, 32], strides = [1, 1]} : vector<1x128xf32> to vector<1x32xf32>
    %248 = vector.extract_strided_slice %244 {offsets = [0, 64], sizes = [1, 32], strides = [1, 1]} : vector<1x128xf32> to vector<1x32xf32>
    %249 = arith.mulf %246, %233 : vector<1x32xf32>
    %250 = arith.mulf %245, %248 : vector<1x32xf32>
    %251 = arith.addf %249, %250 : vector<1x32xf32>
    %252 = math.tanh %251 : vector<1x32xf32>
    %253 = arith.mulf %247, %252 : vector<1x32xf32>
    %254 = vector.extract_strided_slice %181 {offsets = [4, 0], sizes = [1, 128], strides = [1, 1]} : vector<8x128xf32> to vector<1x128xf32>
    %cst_55 = arith.constant dense<0.000000e+00> : vector<1x128xf32>
    %255 = tpu.matmul %253, %175, %cst_55 {dimension_numbers = #tpu.dot_dimension_numbers<[1], [0], [0], [1], [0, 0, 1, 1], [], []>} : vector<1x32xf32>, vector<32x128xf32>, vector<1x128xf32> -> vector<1x128xf32>
    %256 = arith.addf %254, %255 : vector<1x128xf32>
    %257 = arith.negf %256 : vector<1x128xf32>
    %258 = math.exp %257 : vector<1x128xf32>
    %cst_56 = arith.constant 1.000000e+00 : f32
    %259 = vector.broadcast %cst_56 : f32 to vector<1x128xf32>
    %260 = arith.addf %259, %258 : vector<1x128xf32>
    %261 = arith.divf %259, %260 : vector<1x128xf32>
    %262 = math.tanh %256 : vector<1x128xf32>
    %263 = vector.extract_strided_slice %261 {offsets = [0, 0], sizes = [1, 32], strides = [1, 1]} : vector<1x128xf32> to vector<1x32xf32>
    %264 = vector.extract_strided_slice %261 {offsets = [0, 32], sizes = [1, 32], strides = [1, 1]} : vector<1x128xf32> to vector<1x32xf32>
    %265 = vector.extract_strided_slice %261 {offsets = [0, 96], sizes = [1, 32], strides = [1, 1]} : vector<1x128xf32> to vector<1x32xf32>
    %266 = vector.extract_strided_slice %262 {offsets = [0, 64], sizes = [1, 32], strides = [1, 1]} : vector<1x128xf32> to vector<1x32xf32>
    %267 = arith.mulf %264, %251 : vector<1x32xf32>
    %268 = arith.mulf %263, %266 : vector<1x32xf32>
    %269 = arith.addf %267, %268 : vector<1x32xf32>
    %270 = math.tanh %269 : vector<1x32xf32>
    %271 = arith.mulf %265, %270 : vector<1x32xf32>
    %272 = vector.extract_strided_slice %181 {offsets = [5, 0], sizes = [1, 128], strides = [1, 1]} : vector<8x128xf32> to vector<1x128xf32>
    %cst_57 = arith.constant dense<0.000000e+00> : vector<1x128xf32>
    %273 = tpu.matmul %271, %175, %cst_57 {dimension_numbers = #tpu.dot_dimension_numbers<[1], [0], [0], [1], [0, 0, 1, 1], [], []>} : vector<1x32xf32>, vector<32x128xf32>, vector<1x128xf32> -> vector<1x128xf32>
    %274 = arith.addf %272, %273 : vector<1x128xf32>
    %275 = arith.negf %274 : vector<1x128xf32>
    %276 = math.exp %275 : vector<1x128xf32>
    %cst_58 = arith.constant 1.000000e+00 : f32
    %277 = vector.broadcast %cst_58 : f32 to vector<1x128xf32>
    %278 = arith.addf %277, %276 : vector<1x128xf32>
    %279 = arith.divf %277, %278 : vector<1x128xf32>
    %280 = math.tanh %274 : vector<1x128xf32>
    %281 = vector.extract_strided_slice %279 {offsets = [0, 0], sizes = [1, 32], strides = [1, 1]} : vector<1x128xf32> to vector<1x32xf32>
    %282 = vector.extract_strided_slice %279 {offsets = [0, 32], sizes = [1, 32], strides = [1, 1]} : vector<1x128xf32> to vector<1x32xf32>
    %283 = vector.extract_strided_slice %279 {offsets = [0, 96], sizes = [1, 32], strides = [1, 1]} : vector<1x128xf32> to vector<1x32xf32>
    %284 = vector.extract_strided_slice %280 {offsets = [0, 64], sizes = [1, 32], strides = [1, 1]} : vector<1x128xf32> to vector<1x32xf32>
    %285 = arith.mulf %282, %269 : vector<1x32xf32>
    %286 = arith.mulf %281, %284 : vector<1x32xf32>
    %287 = arith.addf %285, %286 : vector<1x32xf32>
    %288 = math.tanh %287 : vector<1x32xf32>
    %289 = arith.mulf %283, %288 : vector<1x32xf32>
    %290 = vector.extract_strided_slice %181 {offsets = [6, 0], sizes = [1, 128], strides = [1, 1]} : vector<8x128xf32> to vector<1x128xf32>
    %cst_59 = arith.constant dense<0.000000e+00> : vector<1x128xf32>
    %291 = tpu.matmul %289, %175, %cst_59 {dimension_numbers = #tpu.dot_dimension_numbers<[1], [0], [0], [1], [0, 0, 1, 1], [], []>} : vector<1x32xf32>, vector<32x128xf32>, vector<1x128xf32> -> vector<1x128xf32>
    %292 = arith.addf %290, %291 : vector<1x128xf32>
    %293 = arith.negf %292 : vector<1x128xf32>
    %294 = math.exp %293 : vector<1x128xf32>
    %cst_60 = arith.constant 1.000000e+00 : f32
    %295 = vector.broadcast %cst_60 : f32 to vector<1x128xf32>
    %296 = arith.addf %295, %294 : vector<1x128xf32>
    %297 = arith.divf %295, %296 : vector<1x128xf32>
    %298 = math.tanh %292 : vector<1x128xf32>
    %299 = vector.extract_strided_slice %297 {offsets = [0, 0], sizes = [1, 32], strides = [1, 1]} : vector<1x128xf32> to vector<1x32xf32>
    %300 = vector.extract_strided_slice %297 {offsets = [0, 32], sizes = [1, 32], strides = [1, 1]} : vector<1x128xf32> to vector<1x32xf32>
    %301 = vector.extract_strided_slice %297 {offsets = [0, 96], sizes = [1, 32], strides = [1, 1]} : vector<1x128xf32> to vector<1x32xf32>
    %302 = vector.extract_strided_slice %298 {offsets = [0, 64], sizes = [1, 32], strides = [1, 1]} : vector<1x128xf32> to vector<1x32xf32>
    %303 = arith.mulf %300, %287 : vector<1x32xf32>
    %304 = arith.mulf %299, %302 : vector<1x32xf32>
    %305 = arith.addf %303, %304 : vector<1x32xf32>
    %306 = math.tanh %305 : vector<1x32xf32>
    %307 = arith.mulf %301, %306 : vector<1x32xf32>
    %308 = vector.extract_strided_slice %181 {offsets = [7, 0], sizes = [1, 128], strides = [1, 1]} : vector<8x128xf32> to vector<1x128xf32>
    %cst_61 = arith.constant dense<0.000000e+00> : vector<1x128xf32>
    %309 = tpu.matmul %307, %175, %cst_61 {dimension_numbers = #tpu.dot_dimension_numbers<[1], [0], [0], [1], [0, 0, 1, 1], [], []>} : vector<1x32xf32>, vector<32x128xf32>, vector<1x128xf32> -> vector<1x128xf32>
    %310 = arith.addf %308, %309 : vector<1x128xf32>
    %311 = arith.negf %310 : vector<1x128xf32>
    %312 = math.exp %311 : vector<1x128xf32>
    %cst_62 = arith.constant 1.000000e+00 : f32
    %313 = vector.broadcast %cst_62 : f32 to vector<1x128xf32>
    %314 = arith.addf %313, %312 : vector<1x128xf32>
    %315 = arith.divf %313, %314 : vector<1x128xf32>
    %316 = math.tanh %310 : vector<1x128xf32>
    %317 = vector.extract_strided_slice %315 {offsets = [0, 0], sizes = [1, 32], strides = [1, 1]} : vector<1x128xf32> to vector<1x32xf32>
    %318 = vector.extract_strided_slice %315 {offsets = [0, 32], sizes = [1, 32], strides = [1, 1]} : vector<1x128xf32> to vector<1x32xf32>
    %319 = vector.extract_strided_slice %315 {offsets = [0, 96], sizes = [1, 32], strides = [1, 1]} : vector<1x128xf32> to vector<1x32xf32>
    %320 = vector.extract_strided_slice %316 {offsets = [0, 64], sizes = [1, 32], strides = [1, 1]} : vector<1x128xf32> to vector<1x32xf32>
    %321 = arith.mulf %318, %305 : vector<1x32xf32>
    %322 = arith.mulf %317, %320 : vector<1x32xf32>
    %323 = arith.addf %321, %322 : vector<1x32xf32>
    %324 = math.tanh %323 : vector<1x32xf32>
    %325 = arith.mulf %319, %324 : vector<1x32xf32>
    %326 = tpu.concatenate %199, %217, %235, %253, %271, %289, %307, %325 in 0 : vector<1x32xf32>, vector<1x32xf32>, vector<1x32xf32>, vector<1x32xf32>, vector<1x32xf32>, vector<1x32xf32>, vector<1x32xf32>, vector<1x32xf32> -> vector<8x32xf32>
    %327 = arith.index_cast %179 : i32 to index
    %c0_63 = arith.constant 0 : index
    %328 = vector.load %arg8[%327, %c0_63] : memref<8x32xf32, #tpu.memory_space<vmem>>, vector<8x32xf32>
    tpu.vector_store %arg8[%327, %c0_63], %326 {strides = array<i32>} : memref<8x32xf32, #tpu.memory_space<vmem>>, vector<8x32xf32>,
    %c1_i32_64 = arith.constant 1 : i32
    %c0_65 = arith.constant 0 : index
    %c0_66 = arith.constant 0 : index
    %329 = vector.load %arg5[%c0_65, %c0_66] : memref<1x32xf32, #tpu.memory_space<vmem>>, vector<1x32xf32>
    %c0_67 = arith.constant 0 : index
    %c0_68 = arith.constant 0 : index
    %330 = vector.load %arg8[%c0_67, %c0_68] : memref<8x32xf32, #tpu.memory_space<vmem>>, vector<8x32xf32>
    %cst_69 = arith.constant dense<0.000000e+00> : vector<1x8xf32>
    %331 = tpu.matmul %329, %330, %cst_69 {dimension_numbers = #tpu.dot_dimension_numbers<[1], [1], [0], [0], [0, 0, 1, 0], [], []>} : vector<1x32xf32>, vector<8x32xf32>, vector<1x8xf32> -> vector<1x8xf32>
    %c0_70 = arith.constant 0 : index
    %c0_71 = arith.constant 0 : index
    %332 = vector.load %arg6[%c0_70, %c0_71] : memref<1x1xf32, #tpu.memory_space<vmem>>, vector<1x1xf32>
    %333 = vector.broadcast %332 : vector<1x1xf32> to vector<1x8xf32>
    %334 = arith.addf %331, %333 : vector<1x8xf32>
    %c0_72 = arith.constant 0 : index
    %c0_73 = arith.constant 0 : index
    %335 = vector.load %arg7[%c0_72, %c0_73] : memref<1x8xf32, #tpu.memory_space<vmem>>, vector<1x8xf32>
    tpu.vector_store %arg7[%c0_72, %c0_73], %334 {strides = array<i32>} : memref<1x8xf32, #tpu.memory_space<vmem>>, vector<1x8xf32>,
    return
  }
}

</mosaic_0001>

<bundles_post_ra>
// kernel: tpu_custom_call.1
= control target key start
LH: loop header
LB: loop body
LE: loop exit
PB: predicated region body
PF: predicated region fallthrough
CT: control target
= control target key end

     0   :  { %s3165_s0 = inlined_call_operand.hbm [shape: f32[8,32], index: 0, kind: input, shape index: {}]   ;;  %s3166_s1 = inlined_call_operand.hbm [shape: f32[32,128], index: 1, kind: input, shape index: {}]   ;;  %s3167_s2 = inlined_call_operand.hbm [shape: f32[1,32,128], index: 2, kind: input, shape index: {}]   ;;  %s3168_s3 = inlined_call_operand.hbm [shape: f32[2,32,128], index: 3, kind: input, shape index: {}]   ;;  %s3169_s4 = inlined_call_operand.vmem [shape: f32[2,128], index: 4, kind: input, shape index: {}]   ;;  %s3170_s5 = inlined_call_operand.vmem [shape: f32[1,32], index: 5, kind: input, shape index: {}]   ;;  %s3171_s6 = inlined_call_operand.<no memory space> [shape: f32[1,1], index: 6, kind: input, shape index: {}]   ;;  %s3172_s7 = inlined_call_operand.hbm [shape: f32[1,8], index: 7, kind: output, shape index: {}]  }
   0x1   :  { %v12_v0 = vstv %s3171_s6 }
   0x2   :  { %13 = vst [vmem:[#allocation4] sm:$0x1] %v12_v0 }
   0x3   :  { %14 = vsyncpa [#allocation6], 0 }
   0x4   :  { %15 = vsyncpa [#allocation9], 0 }
   0x5   :  { %16 = vsyncpa [#allocation12], 0 }
   0x6   :  { %17 = vsyncpa [#allocation7], 0  ;;  %s2788_s26 = smov [#allocation8]   ;;  %s2670_s30 = scalar_lea.hbm %s3166_s1, 512 }
   0x7   :  { %s33_s27 = sshll.u32 %s2788_s26, 4  ;;  %p2671_p0 = scmp.ne.s32.totalorder %s3166_s1, %s2670_s30  ;;  %s34_s27 = int_to_ptr.vmem [resolvable:$true] %s33_s27 }
   0x8   :  { %p2674_p1 = scmp.lt.u32.totalorder %s2670_s30, %s3166_s1 }
   0xa   :  { %p2676_p2 = pnand %p2674_p1, %p2671_p0 }
   0xc   :  { %2679 = shalt.err (!%p2676_p2)
}
   0xd   :  { %s2680_s6 = scalar_lea.vmem %s34_s27, 512  ;;  %p2685_p4 = scmp.lt.s32.totalorder %s34_s27, %s34_s27 }
   0xe   :  { %p2681_p3 = scmp.ne.s32.totalorder %s34_s27, %s2680_s6  ;;  %p2686_p5 = scmp.lt.s32.totalorder %s2680_s6, %s2680_s6 }
  0x10   :  { %p2687_p6 = por %p2686_p5, %p2685_p4 }
  0x12   :  { %p2688_p7 = pnand %p2687_p6, %p2681_p3 }
  0x14   :  { %2691 = shalt.err (!%p2688_p7)
}
  0x15   :  { %s2789_s12 = smov 128   ;;  %s2790_s13 = smov 8  }
  0x16   :  { %39 = dma.hbm_to_vmem [thread:$0]  %s3166_s1, 512, %s34_s27, [#allocation9], %s2789_s12, %s2789_s12, %s2790_s13  }
  0x17   :  { %s2791_s16 = smov [#allocation5]   ;;  %s2792_s18 = smov [#allocation10]  }
  0x18   :  { %s24_s17 = sshll.u32 %s2791_s16, 4  ;;  %s45_s19 = sshll.u32 %s2792_s18, 4  ;;  %s25_s17 = int_to_ptr.vmem [resolvable:$true] %s24_s17  ;;  %s46_s19 = int_to_ptr.vmem [resolvable:$true] %s45_s19 }
  0x19   :  { %s2692_s22 = scalar_lea.hbm %s3165_s0, 128 }
  0x1a   :  { %p2693_p8 = scmp.ne.s32.totalorder %s3165_s0, %s2692_s22  ;;  %p2696_p9 = scmp.lt.u32.totalorder %s2692_s22, %s3165_s0 }
  0x1c   :  { %p2698_p10 = pnand %p2696_p9, %p2693_p8 }
  0x1e   :  { %2701 = shalt.err (!%p2698_p10)
}
  0x1f   :  { %s2702_s1 = scalar_lea.vmem %s25_s17, 128  ;;  %p2707_p12 = scmp.lt.s32.totalorder %s25_s17, %s25_s17 }
  0x20   :  { %p2703_p11 = scmp.ne.s32.totalorder %s25_s17, %s2702_s1  ;;  %p2708_p13 = scmp.lt.s32.totalorder %s2702_s1, %s2702_s1 }
  0x22   :  { %p2709_p0 = por %p2708_p13, %p2707_p12 }
  0x24   :  { %p2710_p1 = pnand %p2709_p0, %p2703_p11 }
  0x26   :  { %2713 = shalt.err (!%p2710_p1)
}
  0x27   :  { %27 = dma.hbm_to_vmem [thread:$0]  %s3165_s0, 128, %s25_s17, [#allocation6]  }
  0x28   :  { %s2714_s8 = scalar_lea.hbm %s3167_s2, 512 }
  0x29   :  { %p2715_p2 = scmp.ne.s32.totalorder %s3167_s2, %s2714_s8  ;;  %p2718_p3 = scmp.lt.u32.totalorder %s2714_s8, %s3167_s2 }
  0x2b   :  { %p2720_p4 = pnand %p2718_p3, %p2715_p2 }
  0x2d   :  { %2723 = shalt.err (!%p2720_p4)
}
  0x2e   :  { %s2724_s14 = scalar_lea.vmem %s46_s19, 512  ;;  %p2729_p6 = scmp.lt.s32.totalorder %s46_s19, %s46_s19 }
  0x2f   :  { %p2725_p5 = scmp.ne.s32.totalorder %s46_s19, %s2724_s14  ;;  %p2730_p7 = scmp.lt.s32.totalorder %s2724_s14, %s2724_s14 }
  0x31   :  { %p2731_p8 = por %p2730_p7, %p2729_p6 }
  0x33   :  { %p2732_p9 = pnand %p2731_p8, %p2725_p5 }
  0x35   :  { %2735 = shalt.err (!%p2732_p9)
}
  0x36   :  { %51 = dma.hbm_to_vmem [thread:$0]  %s3167_s2, 512, %s46_s19, [#allocation9], %s2789_s12, %s2789_s12, %s2790_s13  }
  0x37   :  { %s2793_s16 = smov [#allocation11]   ;;  %s2736_s21 = scalar_lea.hbm %s3168_s3, 1024 }
  0x38   :  { %s57_s17 = sshll.u32 %s2793_s16, 4  ;;  %p2737_p10 = scmp.ne.s32.totalorder %s3168_s3, %s2736_s21  ;;  %s58_s17 = int_to_ptr.vmem [resolvable:$true] %s57_s17 }
  0x39   :  { %p2740_p11 = scmp.lt.u32.totalorder %s2736_s21, %s3168_s3 }
  0x3b   :  { %p2742_p12 = pnand %p2740_p11, %p2737_p10 }
  0x3d   :  { %2745 = shalt.err (!%p2742_p12)
}
  0x3e   :  { %s2746_s26 = scalar_lea.vmem %s58_s17, 1024  ;;  %p2751_p0 = scmp.lt.s32.totalorder %s58_s17, %s58_s17 }
  0x3f   :  { %p2747_p13 = scmp.ne.s32.totalorder %s58_s17, %s2746_s26  ;;  %p2752_p1 = scmp.lt.s32.totalorder %s2746_s26, %s2746_s26 }
  0x41   :  { %p2753_p2 = por %p2752_p1, %p2751_p0 }
  0x43   :  { %p2754_p3 = pnand %p2753_p2, %p2747_p13 }
  0x45   :  { %2757 = shalt.err (!%p2754_p3)
}
  0x46   :  { %63 = dma.hbm_to_vmem [thread:$0]  %s3168_s3, 1024, %s58_s17, [#allocation12], %s2789_s12, %s2789_s12, %s2790_s13  }
  0x47   :  { %2780 = dma.done.wait [#allocation6], 128  }
  0x48   :  { %2781 = vsyncadd [#allocation6], 4294967168 }
  0x49   :  { %2782 = dma.done.wait [#allocation9], 1024  }
  0x4a   :  { %2783 = vsyncadd [#allocation9], 4294966272 }
  0x4b   :  { %2784 = dma.done.wait [#allocation12], 1024  }
  0x4c   :  { %2785 = vsyncadd [#allocation12], 4294966272  ;;  %v2794_v1 = vmov 0.0|0.0   ;;  %vm2795_vm0 = vmmov 0   ;;  %v2796_v2 = vmov 0.0   ;;  %v83_v3 = vld [vmem:[#allocation8] sm:$0xff] }
  0x4d   :  { %2420 = vmatprep.subr.bf16.mxu0 %v2794_v1  ;;  %2426 = vmatprep.subr.bf16.mxu1 %v2794_v1  ;;  %v84_v4 = vld [vmem:[#allocation8 + $0x8] sm:$0xff]  ;;  %v167_v5 = vld [vmem:[#allocation11] sm:$0xff]  ;;  %v85_v8 = vld [vmem:[#allocation8 + $0x10] sm:$0xff]  ;;  %vm92_vm1 = vcmask 261120   ;;  %s2797_s13 = smov 64   ;;  %s2798_s1 = smov 32  }
  0x4e   :  { %2225 = vmatprep.mubr.msk.f32.mxu0 %vm2795_vm0, %v2796_v2  ;;  %2236 = vmatprep.mubr.msk.f32.mxu1 %vm2795_vm0, %v2796_v2  ;;  %v2421_v6 = vpack.c.bf16 %v84_v4, %v83_v3  ;;  %v168_v7 = vld [vmem:[#allocation11 + $0x8] sm:$0xff]  ;;  %v86_v9 = vld [vmem:[#allocation8 + $0x18] sm:$0xff]  ;;  %v169_v11 = vld [vmem:[#allocation11 + $0x10] sm:$0xff]  ;;  %vm1018_vm2 = vcmask 1040384   ;;  %vm1020_vm3 = vcmask 1041408   ;;  %vm1022_vm4 = vcmask 1042432  }
  0x4f   :  { %v2907_v10 = vpack.c.bf16 %v168_v7, %v167_v5  ;;  %v170_v12 = vld [vmem:[#allocation11 + $0x18] sm:$0xff]  ;;  %v2424_v13 = vpack.c.bf16 %v86_v9, %v85_v8  ;;  %v2089_v16 = vld [vmem:[%s3169_s4] ss:$0 sm:$0xff]  ;;  %vm1024_vm5 = vcmask 1043456   ;;  %vm1026_vm6 = vcmask 1044480   ;;  %s2800_s30 = smov [#allocation13]  }
  0x50   :  { %2422 = vmatpush3.bf16.msra.mxu0 %v2421_v6  ;;  %v2911_v14 = vpack.c.bf16 %v170_v12, %v169_v11  ;;  %v82_v15 = vld [vmem:[#allocation5] sm:$0xff]  ;;  %vm1028_vm7 = vcmask 1045504   ;;  %vm1030_vm8 = vcmask 1046528   ;;  %s2078_s8 = sshll.u32 %s2800_s30, 4  ;;  %vm2070_vm9 = vcmask 57344   ;;  %s2079_s8 = int_to_ptr.vmem [resolvable:$true] %s2078_s8 }
  0x51   :  { %2428 = vmatpush3.bf16.msra.mxu1 %v2907_v10  ;;  %2423 = vmatprep.subr.bf16.mxu0 %v2794_v1  ;;  %s2758_s9 = scalar_lea.vmem %s2079_s8, 16  ;;  %s2762_s10 = scalar_lea.vmem %s2079_s8, 32 }
  0x52   :  { %2429 = vmatprep.subr.bf16.mxu1 %v2794_v1  ;;  %p2759_p4 = scmp.ne.s32.totalorder %s2079_s8, %s2758_s9  ;;  %p2763_p5 = scmp.lt.s32.totalorder %s2079_s8, %s2079_s8 }
  0x53   :  { %p2764_p6 = scmp.lt.s32.totalorder %s2762_s10, %s2758_s9 }
  0x54   :  { %2425 = vmatpush3.bf16.msra.mxu0 %v2424_v13 }
  0x55   :  { %2431 = vmatpush3.bf16.msra.mxu1 %v2911_v14  ;;  %2432 = vmatprep.subr.bf16.mxu0 %v2794_v1  ;;  %p2765_p7 = por %p2764_p6, %p2763_p5 }
  0x56   :  { %2438 = vmatprep.subr.bf16.mxu1 %v2794_v1 }
  0x57   :  { %2226 = vmatmul.mubr.msk.f32.vlgmr.msra.gmra.mrb[0].mxu0 %vm92_vm1, %v82_v15  ;;  %p2766_p8 = pnand %p2765_p7, %p2759_p4 }
  0x58   :  { %2237 = vmatmul.mubr.f32.vlgmr.msra.gmra.mrb[0].mxu1 %v2796_v2  ;;  %2434 = vmatpush3.bf16.msra.mxu0 %v2907_v10 }
  0x59   :  { %2435 = vmatprep.subr.bf16.mxu0 %v2794_v1  ;;  %2247 = vmatprep.mubr.msk.f32.mxu0 %vm2795_vm0, %v2796_v2 }
  0x5a   :  { %2440 = vmatpush3.bf16.msra.mxu1 %v2907_v10  ;;  %2258 = vmatprep.mubr.msk.f32.mxu1 %vm2795_vm0, %v2796_v2 }
  0x5b   :  { %2441 = vmatprep.subr.bf16.mxu1 %v2794_v1 }
  0x5c   :  { %2437 = vmatpush3.bf16.msra.mxu0 %v2911_v14 }
  0x5d   :  { %2444 = vmatprep.subr.bf16.mxu0 %v2794_v1 }
  0x5e   :  { %2443 = vmatpush3.bf16.msra.mxu1 %v2911_v14 }
  0x5f   :  { %2450 = vmatprep.subr.bf16.mxu1 %v2794_v1 }
 0x12a   :  { %v162_v17 = vpop.f32.mrb[0].mxu0 }
 0x12b   :  { %v2934_v18 = vadd.f32 %v2089_v16, %v162_v17  ;;  %v2227_v19 = vpop.f32.mrb[1].mxu0  ;;  %v241_v20 = vpop.f32.mrb[0].mxu1 }
 0x12c   :  { %v2238_v21 = vpop.f32.mrb[1].mxu1 }
 0x12d   :  { %v245_v22 = vadd.f32 %v241_v20, %v2934_v18 }
 0x12f   :  { %2542 = vtanh.f32 %v245_v22  ;;  %v2091_v24 = vmul.f32 -1.442695, %v245_v22 }
 0x131   :  { %2544 = vpow2.f32 %v2091_v24 }
 0x139   :  { %v2543_v23 = vpop.eup %2542 }
 0x13a   :  { %255 = vrot.lane.b32.xlu0 %v2543_v23, %s2797_s13 }
 0x13b   :  { %v2545_v25 = vpop.eup %2544 }
 0x13c   :  { %v249_v26 = vadd.f32 1.0, %v2545_v25 }
 0x13e   :  { %2546 = vrcp.f32 %v249_v26 }
 0x148   :  { %v2547_v27 = vpop.eup %2546 }
 0x149   :  { %v253_v30 = vmul.f32 0.0, %v2547_v27 }
 0x1ac   :  { %v256_v28 = vpop.permute.xlu0 %255 }
 0x1ad   :  { %v258_v29 = vmul.f32 %v2547_v27, %v256_v28 }
 0x1af   :  { %260 = vrot.lane.b32.xlu0 %v258_v29, %s2798_s1 }
 0x221   :  { %v261_v31 = vpop.permute.xlu0 %260 }
 0x222   :  { %v263_v32 = vadd.f32 %v261_v31, %v253_v30 }
 0x224   :  { %2548 = vtanh.f32 %v263_v32  ;;  %v357_v48 = vrot.slane %v263_v32, 7 }
 0x22e   :  { %v2549_v33 = vpop.eup %2548 }
 0x22f   :  { %266 = vrot.lane.b32.xlu1 %v2549_v33, %s2797_s13 }
 0x2a1   :  { %v267_v34 = vpop.permute.xlu1 %266 }
 0x2a2   :  { %v2940_v35 = vmul.f32 %v2547_v27, %v267_v34 }
 0x2a4   :  { %271 = vrot.lane.b32.xlu1 %v2940_v35, %s2798_s1 }
 0x316   :  { %v272_v36 = vpop.permute.xlu1 %271 }
 0x317   :  { %2248 = vmatmul.mubr.msk.f32.vlgmr.msra.gmra.mrb[2].mxu0 %vm92_vm1, %v272_v36 }
 0x318   :  { %2446 = vmatpush3.bf16.msra.mxu0 %v2907_v10  ;;  %2269 = vmatprep.mubr.msk.f32.mxu0 %vm2795_vm0, %v2796_v2 }
 0x319   :  { %2447 = vmatprep.subr.bf16.mxu0 %v2794_v1 }
 0x31c   :  { %2449 = vmatpush3.bf16.msra.mxu0 %v2911_v14 }
 0x31d   :  { %2456 = vmatprep.subr.bf16.mxu0 %v2794_v1 }
 0x3ea   :  { %v341_v37 = vpop.f32.mrb[2].mxu0 }
 0x3eb   :  { %v346_v38 = vrot.slane %v341_v37, 7  ;;  %v2249_v39 = vpop.f32.mrb[3].mxu0 }
 0x3ed   :  { %v348_v40 = vadd.f32 %v346_v38, %v2934_v18 }
 0x3ef   :  { %2550 = vtanh.f32 %v348_v40  ;;  %v2093_v42 = vmul.f32 -1.442695, %v348_v40 }
 0x3f1   :  { %2552 = vpow2.f32 %v2093_v42 }
 0x3f9   :  { %v2551_v41 = vpop.eup %2550 }
 0x3fa   :  { %361 = vrot.lane.b32.xlu0 %v2551_v41, %s2797_s13 }
 0x3fb   :  { %v2553_v43 = vpop.eup %2552 }
 0x3fc   :  { %v352_v44 = vadd.f32 1.0, %v2553_v43 }
 0x3fe   :  { %2554 = vrcp.f32 %v352_v44 }
 0x408   :  { %v2555_v45 = vpop.eup %2554 }
 0x409   :  { %v359_v49 = vmul.f32 %v2555_v45, %v357_v48 }
 0x46c   :  { %v362_v46 = vpop.permute.xlu0 %361 }
 0x46d   :  { %v364_v47 = vmul.f32 %v2555_v45, %v362_v46 }
 0x46f   :  { %366 = vrot.lane.b32.xlu1 %v364_v47, %s2798_s1 }
 0x4e1   :  { %v367_v50 = vpop.permute.xlu1 %366 }
 0x4e2   :  { %v369_v51 = vadd.f32 %v367_v50, %v359_v49 }
 0x4e4   :  { %2556 = vtanh.f32 %v369_v51  ;;  %v464_v6 = vrot.slane %v369_v51, 7 }
 0x4ee   :  { %v2557_v52 = vpop.eup %2556 }
 0x4ef   :  { %372 = vrot.lane.b32.xlu0 %v2557_v52, %s2797_s13 }
 0x561   :  { %v373_v53 = vpop.permute.xlu0 %372 }
 0x562   :  { %v375_v54 = vmul.f32 %v2555_v45, %v373_v53 }
 0x564   :  { %v377_v55 = vrot.slane %v375_v54, 1  ;;  %v1019_v15 = vsel %vm1018_vm2, %v2940_v35, %v375_v54 }
 0x566   :  { %378 = vrot.lane.b32.xlu1 %v377_v55, %s2798_s1 }
 0x5d8   :  { %v379_v56 = vpop.permute.xlu1 %378 }
 0x5d9   :  { %2259 = vmatmul.mubr.msk.f32.vlgmr.msra.gmra.mrb[2].mxu1 %vm92_vm1, %v379_v56 }
 0x5da   :  { %2452 = vmatpush3.bf16.msra.mxu1 %v2907_v10  ;;  %2280 = vmatprep.mubr.msk.f32.mxu1 %vm2795_vm0, %v2796_v2 }
 0x5db   :  { %2453 = vmatprep.subr.bf16.mxu1 %v2794_v1 }
 0x5de   :  { %2455 = vmatpush3.bf16.msra.mxu1 %v2911_v14 }
 0x5df   :  { %2462 = vmatprep.subr.bf16.mxu1 %v2794_v1 }
 0x6ac   :  { %v448_v57 = vpop.f32.mrb[2].mxu1 }
 0x6ad   :  { %v453_v58 = vrot.slane %v448_v57, 6  ;;  %v2260_v59 = vpop.f32.mrb[3].mxu1 }
 0x6af   :  { %v455_v60 = vadd.f32 %v453_v58, %v2934_v18 }
 0x6b1   :  { %2558 = vtanh.f32 %v455_v60  ;;  %v2095_v62 = vmul.f32 -1.442695, %v455_v60 }
 0x6b3   :  { %2560 = vpow2.f32 %v2095_v62 }
 0x6bb   :  { %v2559_v61 = vpop.eup %2558 }
 0x6bc   :  { %468 = vrot.lane.b32.xlu0 %v2559_v61, %s2797_s13 }
 0x6bd   :  { %v2561_v63 = vpop.eup %2560 }
 0x6be   :  { %v459_v0 = vadd.f32 1.0, %v2561_v63 }
 0x6c0   :  { %2562 = vrcp.f32 %v459_v0 }
 0x6ca   :  { %v2563_v3 = vpop.eup %2562 }
 0x6cb   :  { %v466_v7 = vmul.f32 %v2563_v3, %v464_v6 }
 0x72e   :  { %v469_v4 = vpop.permute.xlu0 %468 }
 0x72f   :  { %v471_v5 = vmul.f32 %v2563_v3, %v469_v4 }
 0x731   :  { %473 = vrot.lane.b32.xlu1 %v471_v5, %s2798_s1 }
 0x7a3   :  { %v474_v8 = vpop.permute.xlu1 %473 }
 0x7a4   :  { %v476_v9 = vadd.f32 %v474_v8, %v466_v7 }
 0x7a6   :  { %2564 = vtanh.f32 %v476_v9  ;;  %v571_v31 = vrot.slane %v476_v9, 7 }
 0x7b0   :  { %v2565_v11 = vpop.eup %2564 }
 0x7b1   :  { %479 = vrot.lane.b32.xlu0 %v2565_v11, %s2797_s13 }
 0x823   :  { %v480_v12 = vpop.permute.xlu0 %479 }
 0x824   :  { %v482_v13 = vmul.f32 %v2563_v3, %v480_v12 }
 0x826   :  { %v484_v16 = vrot.slane %v482_v13, 2  ;;  %v1021_v17 = vsel %vm1020_vm3, %v1019_v15, %v482_v13 }
 0x828   :  { %485 = vrot.lane.b32.xlu1 %v484_v16, %s2798_s1 }
 0x89a   :  { %v486_v19 = vpop.permute.xlu1 %485 }
 0x89b   :  { %2270 = vmatmul.mubr.msk.f32.vlgmr.msra.gmra.mrb[4].mxu0 %vm92_vm1, %v486_v19 }
 0x89c   :  { %2458 = vmatpush3.bf16.msra.mxu0 %v2907_v10  ;;  %2291 = vmatprep.mubr.msk.f32.mxu0 %vm2795_vm0, %v2796_v2 }
 0x89d   :  { %2459 = vmatprep.subr.bf16.mxu0 %v2794_v1 }
 0x8a0   :  { %2461 = vmatpush3.bf16.msra.mxu0 %v2911_v14 }
 0x8a1   :  { %2468 = vmatprep.subr.bf16.mxu0 %v2794_v1 }
 0x96e   :  { %v555_v20 = vpop.f32.mrb[4].mxu0 }
 0x96f   :  { %v560_v21 = vrot.slane %v555_v20, 5  ;;  %v2271_v22 = vpop.f32.mrb[5].mxu0 }
 0x971   :  { %v562_v23 = vadd.f32 %v560_v21, %v2934_v18 }
 0x973   :  { %2566 = vtanh.f32 %v562_v23  ;;  %v2097_v25 = vmul.f32 -1.442695, %v562_v23 }
 0x975   :  { %2568 = vpow2.f32 %v2097_v25 }
 0x97d   :  { %v2567_v24 = vpop.eup %2566 }
 0x97e   :  { %575 = vrot.lane.b32.xlu0 %v2567_v24, %s2797_s13 }
 0x97f   :  { %v2569_v26 = vpop.eup %2568 }
 0x980   :  { %v566_v27 = vadd.f32 1.0, %v2569_v26 }
 0x982   :  { %2570 = vrcp.f32 %v566_v27 }
 0x98c   :  { %v2571_v28 = vpop.eup %2570 }
 0x98d   :  { %v573_v32 = vmul.f32 %v2571_v28, %v571_v31 }
 0x9f0   :  { %v576_v29 = vpop.permute.xlu0 %575 }
 0x9f1   :  { %v578_v30 = vmul.f32 %v2571_v28, %v576_v29 }
 0x9f3   :  { %580 = vrot.lane.b32.xlu1 %v578_v30, %s2798_s1 }
 0xa65   :  { %v581_v33 = vpop.permute.xlu1 %580 }
 0xa66   :  { %v583_v34 = vadd.f32 %v581_v33, %v573_v32 }
 0xa68   :  { %2572 = vtanh.f32 %v583_v34  ;;  %v678_v52 = vrot.slane %v583_v34, 7 }
 0xa72   :  { %v2573_v35 = vpop.eup %2572 }
 0xa73   :  { %586 = vrot.lane.b32.xlu0 %v2573_v35, %s2797_s13 }
 0xae5   :  { %v587_v36 = vpop.permute.xlu0 %586 }
 0xae6   :  { %v589_v37 = vmul.f32 %v2571_v28, %v587_v36 }
 0xae8   :  { %v591_v38 = vrot.slane %v589_v37, 3  ;;  %v1023_v39 = vsel %vm1022_vm4, %v1021_v17, %v589_v37 }
 0xaea   :  { %592 = vrot.lane.b32.xlu1 %v591_v38, %s2798_s1 }
 0xb5c   :  { %v593_v40 = vpop.permute.xlu1 %592 }
 0xb5d   :  { %2281 = vmatmul.mubr.msk.f32.vlgmr.msra.gmra.mrb[4].mxu1 %vm92_vm1, %v593_v40 }
 0xb5e   :  { %2464 = vmatpush3.bf16.msra.mxu1 %v2907_v10  ;;  %2302 = vmatprep.mubr.msk.f32.mxu1 %vm2795_vm0, %v2796_v2 }
 0xb5f   :  { %2465 = vmatprep.subr.bf16.mxu1 %v2794_v1 }
 0xb62   :  { %2467 = vmatpush3.bf16.msra.mxu1 %v2911_v14 }
 0xb63   :  { %2474 = vmatprep.subr.bf16.mxu1 %v2794_v1 }
 0xc30   :  { %v662_v41 = vpop.f32.mrb[4].mxu1 }
 0xc31   :  { %v667_v42 = vrot.slane %v662_v41, 4  ;;  %v2282_v43 = vpop.f32.mrb[5].mxu1 }
 0xc33   :  { %v669_v44 = vadd.f32 %v667_v42, %v2934_v18 }
 0xc35   :  { %2574 = vtanh.f32 %v669_v44  ;;  %v2099_v46 = vmul.f32 -1.442695, %v669_v44 }
 0xc37   :  { %2576 = vpow2.f32 %v2099_v46 }
 0xc3f   :  { %v2575_v45 = vpop.eup %2574 }
 0xc40   :  { %682 = vrot.lane.b32.xlu0 %v2575_v45, %s2797_s13 }
 0xc41   :  { %v2577_v47 = vpop.eup %2576 }
 0xc42   :  { %v673_v48 = vadd.f32 1.0, %v2577_v47 }
 0xc44   :  { %2578 = vrcp.f32 %v673_v48 }
 0xc4e   :  { %v2579_v49 = vpop.eup %2578 }
 0xc4f   :  { %v680_v53 = vmul.f32 %v2579_v49, %v678_v52 }
 0xcb2   :  { %v683_v50 = vpop.permute.xlu0 %682 }
 0xcb3   :  { %v685_v51 = vmul.f32 %v2579_v49, %v683_v50 }
 0xcb5   :  { %687 = vrot.lane.b32.xlu1 %v685_v51, %s2798_s1 }
 0xd27   :  { %v688_v54 = vpop.permute.xlu1 %687 }
 0xd28   :  { %v690_v55 = vadd.f32 %v688_v54, %v680_v53 }
 0xd2a   :  { %2580 = vtanh.f32 %v690_v55 }
 0xd34   :  { %v2581_v56 = vpop.eup %2580 }
 0xd35   :  { %693 = vrot.lane.b32.xlu0 %v2581_v56, %s2797_s13 }
 0xda7   :  { %v694_v57 = vpop.permute.xlu0 %693 }
 0xda8   :  { %v696_v58 = vmul.f32 %v2579_v49, %v694_v57 }
 0xdaa   :  { %v698_v59 = vrot.slane %v696_v58, 4  ;;  %v1025_v60 = vsel %vm1024_vm5, %v1023_v39, %v696_v58  ;;  %v1038_v58 = vld [vmem:[#allocation10] sm:$0xff] }
 0xdac   :  { %699 = vrot.lane.b32.xlu1 %v698_v59, %s2798_s1  ;;  %v1039_v59 = vld [vmem:[#allocation10 + $0x8] sm:$0xff] }
 0xe1e   :  { %v700_v61 = vpop.permute.xlu1 %699 }
 0xe1f   :  { %2292 = vmatmul.mubr.msk.f32.vlgmr.msra.gmra.mrb[6].mxu0 %vm92_vm1, %v700_v61  ;;  %v1122_v61 = vld [vmem:[#allocation11 + $0x20] sm:$0xff] }
 0xe20   :  { %2470 = vmatpush3.bf16.msra.mxu0 %v2907_v10  ;;  %2313 = vmatprep.mubr.msk.f32.mxu0 %vm2795_vm0, %v2796_v2 }
 0xe21   :  { %2471 = vmatprep.subr.bf16.mxu0 %v2794_v1 }
 0xe24   :  { %2473 = vmatpush3.bf16.msra.mxu0 %v2911_v14  ;;  %v785_v14 = vrot.slane %v690_v55, 7 }
 0xe25   :  { %2480 = vmatprep.subr.bf16.mxu0 %v2794_v1 }
 0xef2   :  { %v769_v62 = vpop.f32.mrb[6].mxu0 }
 0xef3   :  { %v774_v63 = vrot.slane %v769_v62, 3  ;;  %v2293_v0 = vpop.f32.mrb[7].mxu0  ;;  %v1123_v62 = vld [vmem:[#allocation11 + $0x28] sm:$0xff] }
 0xef4   :  { %v1040_v0 = vld [vmem:[#allocation10 + $0x10] sm:$0xff] }
 0xef5   :  { %v776_v3 = vadd.f32 %v774_v63, %v2934_v18  ;;  %v3026_v63 = vpack.c.bf16 %v1123_v62, %v1122_v61 }
 0xef7   :  { %2582 = vtanh.f32 %v776_v3  ;;  %v2101_v5 = vmul.f32 -1.442695, %v776_v3  ;;  %v1041_v3 = vld [vmem:[#allocation10 + $0x18] sm:$0xff] }
 0xef9   :  { %2584 = vpow2.f32 %v2101_v5  ;;  %v2478_v5 = vpack.c.bf16 %v1041_v3, %v1040_v0 }
 0xf01   :  { %v2583_v4 = vpop.eup %2582 }
 0xf02   :  { %789 = vrot.lane.b32.xlu0 %v2583_v4, %s2797_s13  ;;  %v1124_v4 = vld [vmem:[#allocation11 + $0x30] sm:$0xff] }
 0xf03   :  { %v2585_v10 = vpop.eup %2584 }
 0xf04   :  { %v780_v6 = vadd.f32 1.0, %v2585_v10  ;;  %v1125_v10 = vld [vmem:[#allocation11 + $0x38] sm:$0xff] }
 0xf06   :  { %2586 = vrcp.f32 %v780_v6  ;;  %v3030_v6 = vpack.c.bf16 %v1125_v10, %v1124_v4 }
 0xf10   :  { %v2587_v7 = vpop.eup %2586 }
 0xf11   :  { %v787_v11 = vmul.f32 %v2587_v7, %v785_v14 }
 0xf74   :  { %v790_v8 = vpop.permute.xlu0 %789 }
 0xf75   :  { %v792_v9 = vmul.f32 %v2587_v7, %v790_v8 }
 0xf77   :  { %794 = vrot.lane.b32.xlu1 %v792_v9, %s2798_s1 }
 0xfe9   :  { %v795_v12 = vpop.permute.xlu1 %794 }
 0xfea   :  { %v797_v13 = vadd.f32 %v795_v12, %v787_v11 }
 0xfec   :  { %2588 = vtanh.f32 %v797_v13  ;;  %v892_v33 = vrot.slane %v797_v13, 7 }
 0xff6   :  { %v2589_v15 = vpop.eup %2588 }
 0xff7   :  { %800 = vrot.lane.b32.xlu0 %v2589_v15, %s2797_s13  ;;  %v2106_v15 = vld [vmem:[%s3169_s4 + $0x1] ss:$0 sm:$0xff] }
0x1069   :  { %v801_v16 = vpop.permute.xlu0 %800 }
0x106a   :  { %v803_v17 = vmul.f32 %v2587_v7, %v801_v16 }
0x106c   :  { %v805_v19 = vrot.slane %v803_v17, 5  ;;  %v1027_v20 = vsel %vm1026_vm6, %v1025_v60, %v803_v17  ;;  %v2475_v60 = vpack.c.bf16 %v1039_v59, %v1038_v58 }
0x106e   :  { %806 = vrot.lane.b32.xlu1 %v805_v19, %s2798_s1 }
0x10e0   :  { %v807_v21 = vpop.permute.xlu1 %806 }
0x10e1   :  { %2303 = vmatmul.mubr.msk.f32.vlgmr.msra.gmra.mrb[6].mxu1 %vm92_vm1, %v807_v21 }
0x10e2   :  { %2324 = vmatprep.mubr.msk.f32.mxu1 %vm2795_vm0, %v2796_v2  ;;  %2476 = vmatpush3.bf16.msra.mxu1 %v2475_v60 }
0x10e3   :  { %2477 = vmatprep.subr.bf16.mxu1 %v2794_v1 }
0x10e6   :  { %2479 = vmatpush3.bf16.msra.mxu1 %v2478_v5 }
0x10e7   :  { %2486 = vmatprep.subr.bf16.mxu1 %v2794_v1 }
0x11b4   :  { %v876_v22 = vpop.f32.mrb[6].mxu1 }
0x11b5   :  { %v881_v23 = vrot.slane %v876_v22, 2  ;;  %v2304_v24 = vpop.f32.mrb[7].mxu1 }
0x11b7   :  { %v883_v25 = vadd.f32 %v881_v23, %v2934_v18 }
0x11b9   :  { %2590 = vtanh.f32 %v883_v25  ;;  %v2103_v27 = vmul.f32 -1.442695, %v883_v25 }
0x11bb   :  { %2592 = vpow2.f32 %v2103_v27 }
0x11c3   :  { %v2591_v26 = vpop.eup %2590 }
0x11c4   :  { %896 = vrot.lane.b32.xlu0 %v2591_v26, %s2797_s13 }
0x11c5   :  { %v2593_v28 = vpop.eup %2592 }
0x11c6   :  { %v887_v29 = vadd.f32 1.0, %v2593_v28 }
0x11c8   :  { %2594 = vrcp.f32 %v887_v29 }
0x11d2   :  { %v2595_v30 = vpop.eup %2594 }
0x11d3   :  { %v894_v34 = vmul.f32 %v2595_v30, %v892_v33 }
0x1236   :  { %v897_v31 = vpop.permute.xlu0 %896 }
0x1237   :  { %v899_v32 = vmul.f32 %v2595_v30, %v897_v31 }
0x1239   :  { %901 = vrot.lane.b32.xlu1 %v899_v32, %s2798_s1 }
0x12ab   :  { %v902_v35 = vpop.permute.xlu1 %901 }
0x12ac   :  { %v904_v36 = vadd.f32 %v902_v35, %v894_v34 }
0x12ae   :  { %2596 = vtanh.f32 %v904_v36  ;;  %v999_v54 = vrot.slane %v904_v36, 7 }
0x12b8   :  { %v2597_v37 = vpop.eup %2596 }
0x12b9   :  { %907 = vrot.lane.b32.xlu0 %v2597_v37, %s2797_s13 }
0x132b   :  { %v908_v38 = vpop.permute.xlu0 %907 }
0x132c   :  { %v910_v39 = vmul.f32 %v2595_v30, %v908_v38 }
0x132e   :  { %v912_v40 = vrot.slane %v910_v39, 6  ;;  %v1029_v41 = vsel %vm1028_vm7, %v1027_v20, %v910_v39 }
0x1330   :  { %913 = vrot.lane.b32.xlu1 %v912_v40, %s2798_s1 }
0x13a2   :  { %v914_v42 = vpop.permute.xlu1 %913 }
0x13a3   :  { %2314 = vmatmul.mubr.msk.f32.vlgmr.msra.gmra.mrb[8].mxu0 %vm92_vm1, %v914_v42 }
0x13a4   :  { %2335 = vmatprep.mubr.msk.f32.mxu0 %vm2795_vm0, %v2796_v2  ;;  %2482 = vmatpush3.bf16.msra.mxu0 %v3026_v63 }
0x13a5   :  { %2483 = vmatprep.subr.bf16.mxu0 %v2794_v1 }
0x13a8   :  { %2485 = vmatpush3.bf16.msra.mxu0 %v3030_v6 }
0x13a9   :  { %2492 = vmatprep.subr.bf16.mxu0 %v2794_v1 }
0x13ab   :  { %2336 = vmatmul.mubr.f32.vlgmr.msra.gmra.mrb[10].mxu0 %v2796_v2 }
0x13ac   :  { %2494 = vmatpush3.bf16.msra.mxu0 %v3026_v63  ;;  %2357 = vmatprep.mubr.msk.f32.mxu0 %vm2795_vm0, %v2796_v2 }
0x13ad   :  { %2495 = vmatprep.subr.bf16.mxu0 %v2794_v1 }
0x13b0   :  { %2497 = vmatpush3.bf16.msra.mxu0 %v3030_v6 }
0x13b1   :  { %2504 = vmatprep.subr.bf16.mxu0 %v2794_v1 }
0x1476   :  { %v983_v43 = vpop.f32.mrb[8].mxu0 }
0x1477   :  { %v988_v44 = vrot.slane %v983_v43, 1  ;;  %v2315_v45 = vpop.f32.mrb[9].mxu0 }
0x1479   :  { %v990_v46 = vadd.f32 %v988_v44, %v2934_v18 }
0x147b   :  { %2598 = vtanh.f32 %v990_v46  ;;  %v2105_v48 = vmul.f32 -1.442695, %v990_v46 }
0x147d   :  { %2600 = vpow2.f32 %v2105_v48 }
0x147e   :  { %v1193_v12 = vpop.f32.mrb[10].mxu0 }
0x147f   :  { %v2337_v13 = vpop.f32.mrb[11].mxu0 }
0x1485   :  { %v2599_v47 = vpop.eup %2598 }
0x1486   :  { %1003 = vrot.lane.b32.xlu0 %v2599_v47, %s2797_s13 }
0x1487   :  { %v2601_v49 = vpop.eup %2600 }
0x1488   :  { %v994_v50 = vadd.f32 1.0, %v2601_v49 }
0x148a   :  { %2602 = vrcp.f32 %v994_v50 }
0x1494   :  { %v2603_v51 = vpop.eup %2602 }
0x1495   :  { %v1001_v55 = vmul.f32 %v2603_v51, %v999_v54 }
0x14f8   :  { %v1004_v52 = vpop.permute.xlu0 %1003 }
0x14f9   :  { %v1006_v53 = vmul.f32 %v2603_v51, %v1004_v52 }
0x14fb   :  { %1008 = vrot.lane.b32.xlu1 %v1006_v53, %s2798_s1 }
0x156d   :  { %v1009_v56 = vpop.permute.xlu1 %1008 }
0x156e   :  { %v1011_v57 = vadd.f32 %v1009_v56, %v1001_v55 }
0x1570   :  { %2604 = vtanh.f32 %v1011_v57 }
0x157a   :  { %v2605_v18 = vpop.eup %2604 }
0x157b   :  { %1014 = vrot.lane.b32.xlu0 %v2605_v18, %s2797_s13 }
0x15ed   :  { %v1015_v7 = vpop.permute.xlu0 %1014 }
0x15ee   :  { %v1017_v8 = vmul.f32 %v2603_v51, %v1015_v7 }
0x15f0   :  { %v1031_v9 = vsel %vm1030_vm8, %v1029_v41, %v1017_v8 }
0x15f1   :  { %1033 = vrot.lane.b32.xlu1 %v1031_v9, %s2798_s1 }
0x1663   :  { %v1034_v14 = vpop.permute.xlu1 %1033 }
0x1664   :  { %1036 = vst.msk [vmem:[#allocation2] sm:$0xff] %vm92_vm1, %v1034_v14 }
0x166b   :  { %v1037_v11 = vld [vmem:[#allocation2] sm:$0xff] }
0x166c   :  { %2325 = vmatmul.mubr.msk.f32.vlgmr.msra.gmra.mrb[8].mxu1 %vm92_vm1, %v1037_v11 }
0x166d   :  { %2488 = vmatpush3.bf16.msra.mxu1 %v3026_v63  ;;  %2346 = vmatprep.mubr.msk.f32.mxu1 %vm2795_vm0, %v2796_v2 }
0x166e   :  { %2489 = vmatprep.subr.bf16.mxu1 %v2794_v1 }
0x1671   :  { %2491 = vmatpush3.bf16.msra.mxu1 %v3030_v6 }
0x1672   :  { %2498 = vmatprep.subr.bf16.mxu1 %v2794_v1 }
0x173f   :  { %v1116_v16 = vpop.f32.mrb[8].mxu1 }
0x1740   :  { %v3056_v17 = vadd.f32 %v2106_v15, %v1116_v16  ;;  %v2326_v19 = vpop.f32.mrb[9].mxu1 }
0x1742   :  { %v1197_v20 = vadd.f32 %v1193_v12, %v3056_v17 }
0x1744   :  { %2606 = vtanh.f32 %v1197_v20  ;;  %v2108_v22 = vmul.f32 -1.442695, %v1197_v20 }
0x1746   :  { %2608 = vpow2.f32 %v2108_v22 }
0x174e   :  { %v2607_v21 = vpop.eup %2606 }
0x174f   :  { %1207 = vrot.lane.b32.xlu0 %v2607_v21, %s2797_s13 }
0x1750   :  { %v2609_v23 = vpop.eup %2608 }
0x1751   :  { %v1201_v24 = vadd.f32 1.0, %v2609_v23 }
0x1753   :  { %2610 = vrcp.f32 %v1201_v24 }
0x175d   :  { %v2611_v25 = vpop.eup %2610 }
0x175e   :  { %v1205_v28 = vmul.f32 0.0, %v2611_v25 }
0x17c1   :  { %v1208_v26 = vpop.permute.xlu0 %1207 }
0x17c2   :  { %v1210_v27 = vmul.f32 %v2611_v25, %v1208_v26 }
0x17c4   :  { %1212 = vrot.lane.b32.xlu1 %v1210_v27, %s2798_s1 }
0x1836   :  { %v1213_v29 = vpop.permute.xlu1 %1212 }
0x1837   :  { %v1215_v30 = vadd.f32 %v1213_v29, %v1205_v28 }
0x1839   :  { %2612 = vtanh.f32 %v1215_v30  ;;  %v1309_v46 = vrot.slane %v1215_v30, 7 }
0x1843   :  { %v2613_v31 = vpop.eup %2612 }
0x1844   :  { %1218 = vrot.lane.b32.xlu0 %v2613_v31, %s2797_s13 }
0x18b6   :  { %v1219_v32 = vpop.permute.xlu0 %1218 }
0x18b7   :  { %v3062_v33 = vmul.f32 %v2611_v25, %v1219_v32 }
0x18b9   :  { %1223 = vrot.lane.b32.xlu1 %v3062_v33, %s2798_s1 }
0x192b   :  { %v1224_v34 = vpop.permute.xlu1 %1223 }
0x192c   :  { %2347 = vmatmul.mubr.msk.f32.vlgmr.msra.gmra.mrb[10].mxu1 %vm92_vm1, %v1224_v34 }
0x192d   :  { %2500 = vmatpush3.bf16.msra.mxu1 %v3026_v63  ;;  %2368 = vmatprep.mubr.msk.f32.mxu1 %vm2795_vm0, %v2796_v2 }
0x192e   :  { %2501 = vmatprep.subr.bf16.mxu1 %v2794_v1 }
0x1931   :  { %2503 = vmatpush3.bf16.msra.mxu1 %v3030_v6 }
0x1932   :  { %2510 = vmatprep.subr.bf16.mxu1 %v2794_v1 }
0x19ff   :  { %v1293_v35 = vpop.f32.mrb[10].mxu1 }
0x1a00   :  { %v1298_v36 = vrot.slane %v1293_v35, 7  ;;  %v2348_v37 = vpop.f32.mrb[11].mxu1 }
0x1a02   :  { %v1300_v38 = vadd.f32 %v1298_v36, %v3056_v17 }
0x1a04   :  { %2614 = vtanh.f32 %v1300_v38  ;;  %v2110_v40 = vmul.f32 -1.442695, %v1300_v38 }
0x1a06   :  { %2616 = vpow2.f32 %v2110_v40 }
0x1a0e   :  { %v2615_v39 = vpop.eup %2614 }
0x1a0f   :  { %1313 = vrot.lane.b32.xlu0 %v2615_v39, %s2797_s13 }
0x1a10   :  { %v2617_v41 = vpop.eup %2616 }
0x1a11   :  { %v1304_v42 = vadd.f32 1.0, %v2617_v41 }
0x1a13   :  { %2618 = vrcp.f32 %v1304_v42 }
0x1a1d   :  { %v2619_v43 = vpop.eup %2618 }
0x1a1e   :  { %v1311_v47 = vmul.f32 %v2619_v43, %v1309_v46 }
0x1a81   :  { %v1314_v44 = vpop.permute.xlu0 %1313 }
0x1a82   :  { %v1316_v45 = vmul.f32 %v2619_v43, %v1314_v44 }
0x1a84   :  { %1318 = vrot.lane.b32.xlu1 %v1316_v45, %s2798_s1 }
0x1af6   :  { %v1319_v48 = vpop.permute.xlu1 %1318 }
0x1af7   :  { %v1321_v49 = vadd.f32 %v1319_v48, %v1311_v47 }
0x1af9   :  { %2620 = vtanh.f32 %v1321_v49  ;;  %v1416_v4 = vrot.slane %v1321_v49, 7 }
0x1b03   :  { %v2621_v50 = vpop.eup %2620 }
0x1b04   :  { %1324 = vrot.lane.b32.xlu0 %v2621_v50, %s2797_s13 }
0x1b76   :  { %v1325_v51 = vpop.permute.xlu0 %1324 }
0x1b77   :  { %v1327_v52 = vmul.f32 %v2619_v43, %v1325_v51 }
0x1b79   :  { %v1329_v53 = vrot.slane %v1327_v52, 1  ;;  %v1970_v11 = vsel %vm1018_vm2, %v3062_v33, %v1327_v52 }
0x1b7b   :  { %1330 = vrot.lane.b32.xlu1 %v1329_v53, %s2798_s1 }
0x1bed   :  { %v1331_v54 = vpop.permute.xlu1 %1330 }
0x1bee   :  { %2358 = vmatmul.mubr.msk.f32.vlgmr.msra.gmra.mrb[12].mxu0 %vm92_vm1, %v1331_v54 }
0x1bef   :  { %2506 = vmatpush3.bf16.msra.mxu0 %v3026_v63  ;;  %2379 = vmatprep.mubr.msk.f32.mxu0 %vm2795_vm0, %v2796_v2 }
0x1bf0   :  { %2507 = vmatprep.subr.bf16.mxu0 %v2794_v1 }
0x1bf3   :  { %2509 = vmatpush3.bf16.msra.mxu0 %v3030_v6 }
0x1bf4   :  { %2516 = vmatprep.subr.bf16.mxu0 %v2794_v1 }
0x1cc1   :  { %v1400_v55 = vpop.f32.mrb[12].mxu0 }
0x1cc2   :  { %v1405_v56 = vrot.slane %v1400_v55, 6  ;;  %v2359_v57 = vpop.f32.mrb[13].mxu0 }
0x1cc4   :  { %v1407_v18 = vadd.f32 %v1405_v56, %v3056_v17 }
0x1cc6   :  { %2622 = vtanh.f32 %v1407_v18  ;;  %v2112_v59 = vmul.f32 -1.442695, %v1407_v18 }
0x1cc8   :  { %2624 = vpow2.f32 %v2112_v59 }
0x1cd0   :  { %v2623_v58 = vpop.eup %2622 }
0x1cd1   :  { %1420 = vrot.lane.b32.xlu0 %v2623_v58, %s2797_s13 }
0x1cd2   :  { %v2625_v60 = vpop.eup %2624 }
0x1cd3   :  { %v1411_v61 = vadd.f32 1.0, %v2625_v60 }
0x1cd5   :  { %2626 = vrcp.f32 %v1411_v61 }
0x1cdf   :  { %v2627_v62 = vpop.eup %2626 }
0x1ce0   :  { %v1418_v5 = vmul.f32 %v2627_v62, %v1416_v4 }
0x1d43   :  { %v1421_v0 = vpop.permute.xlu0 %1420 }
0x1d44   :  { %v1423_v3 = vmul.f32 %v2627_v62, %v1421_v0 }
0x1d46   :  { %1425 = vrot.lane.b32.xlu1 %v1423_v3, %s2798_s1 }
0x1db8   :  { %v1426_v10 = vpop.permute.xlu1 %1425 }
0x1db9   :  { %v1428_v7 = vadd.f32 %v1426_v10, %v1418_v5 }
0x1dbb   :  { %2628 = vtanh.f32 %v1428_v7  ;;  %v1523_v29 = vrot.slane %v1428_v7, 7 }
0x1dc5   :  { %v2629_v8 = vpop.eup %2628 }
0x1dc6   :  { %1431 = vrot.lane.b32.xlu0 %v2629_v8, %s2797_s13 }
0x1e38   :  { %v1432_v9 = vpop.permute.xlu0 %1431 }
0x1e39   :  { %v1434_v14 = vmul.f32 %v2627_v62, %v1432_v9 }
0x1e3b   :  { %v1436_v12 = vrot.slane %v1434_v14, 2  ;;  %v1971_v13 = vsel %vm1020_vm3, %v1970_v11, %v1434_v14 }
0x1e3d   :  { %1437 = vrot.lane.b32.xlu1 %v1436_v12, %s2798_s1 }
0x1eaf   :  { %v1438_v15 = vpop.permute.xlu1 %1437 }
0x1eb0   :  { %2369 = vmatmul.mubr.msk.f32.vlgmr.msra.gmra.mrb[12].mxu1 %vm92_vm1, %v1438_v15 }
0x1eb1   :  { %2512 = vmatpush3.bf16.msra.mxu1 %v3026_v63  ;;  %2390 = vmatprep.mubr.msk.f32.mxu1 %vm2795_vm0, %v2796_v2 }
0x1eb2   :  { %2513 = vmatprep.subr.bf16.mxu1 %v2794_v1 }
0x1eb5   :  { %2515 = vmatpush3.bf16.msra.mxu1 %v3030_v6 }
0x1eb6   :  { %2522 = vmatprep.subr.bf16.mxu1 %v2794_v1 }
0x1f83   :  { %v1507_v16 = vpop.f32.mrb[12].mxu1 }
0x1f84   :  { %v1512_v19 = vrot.slane %v1507_v16, 5  ;;  %v2370_v20 = vpop.f32.mrb[13].mxu1 }
0x1f86   :  { %v1514_v21 = vadd.f32 %v1512_v19, %v3056_v17 }
0x1f88   :  { %2630 = vtanh.f32 %v1514_v21  ;;  %v2114_v23 = vmul.f32 -1.442695, %v1514_v21 }
0x1f8a   :  { %2632 = vpow2.f32 %v2114_v23 }
0x1f92   :  { %v2631_v22 = vpop.eup %2630 }
0x1f93   :  { %1527 = vrot.lane.b32.xlu0 %v2631_v22, %s2797_s13 }
0x1f94   :  { %v2633_v24 = vpop.eup %2632 }
0x1f95   :  { %v1518_v25 = vadd.f32 1.0, %v2633_v24 }
0x1f97   :  { %2634 = vrcp.f32 %v1518_v25 }
0x1fa1   :  { %v2635_v26 = vpop.eup %2634 }
0x1fa2   :  { %v1525_v30 = vmul.f32 %v2635_v26, %v1523_v29 }
0x2005   :  { %v1528_v27 = vpop.permute.xlu0 %1527 }
0x2006   :  { %v1530_v28 = vmul.f32 %v2635_v26, %v1528_v27 }
0x2008   :  { %1532 = vrot.lane.b32.xlu1 %v1530_v28, %s2798_s1 }
0x207a   :  { %v1533_v31 = vpop.permute.xlu1 %1532 }
0x207b   :  { %v1535_v32 = vadd.f32 %v1533_v31, %v1525_v30 }
0x207d   :  { %2636 = vtanh.f32 %v1535_v32  ;;  %v1630_v50 = vrot.slane %v1535_v32, 7 }
0x2087   :  { %v2637_v33 = vpop.eup %2636 }
0x2088   :  { %1538 = vrot.lane.b32.xlu0 %v2637_v33, %s2797_s13 }
0x20fa   :  { %v1539_v34 = vpop.permute.xlu0 %1538 }
0x20fb   :  { %v1541_v35 = vmul.f32 %v2635_v26, %v1539_v34 }
0x20fd   :  { %v1543_v36 = vrot.slane %v1541_v35, 3  ;;  %v1972_v37 = vsel %vm1022_vm4, %v1971_v13, %v1541_v35 }
0x20ff   :  { %1544 = vrot.lane.b32.xlu1 %v1543_v36, %s2798_s1 }
0x2171   :  { %v1545_v38 = vpop.permute.xlu1 %1544 }
0x2172   :  { %2380 = vmatmul.mubr.msk.f32.vlgmr.msra.gmra.mrb[14].mxu0 %vm92_vm1, %v1545_v38 }
0x2173   :  { %2518 = vmatpush3.bf16.msra.mxu0 %v3026_v63  ;;  %2401 = vmatprep.mubr.msk.f32.mxu0 %vm2795_vm0, %v2796_v2 }
0x2174   :  { %2519 = vmatprep.subr.bf16.mxu0 %v2794_v1 }
0x2177   :  { %2521 = vmatpush3.bf16.msra.mxu0 %v3030_v6 }
0x2178   :  { %2415 = vmatprep.subr.mxu0 %v2796_v2 }
0x2245   :  { %v1614_v39 = vpop.f32.mrb[14].mxu0 }
0x2246   :  { %v1619_v40 = vrot.slane %v1614_v39, 4  ;;  %v2381_v41 = vpop.f32.mrb[15].mxu0 }
0x2248   :  { %v1621_v42 = vadd.f32 %v1619_v40, %v3056_v17 }
0x224a   :  { %2638 = vtanh.f32 %v1621_v42  ;;  %v2116_v44 = vmul.f32 -1.442695, %v1621_v42 }
0x224c   :  { %2640 = vpow2.f32 %v2116_v44 }
0x2254   :  { %v2639_v43 = vpop.eup %2638 }
0x2255   :  { %1634 = vrot.lane.b32.xlu0 %v2639_v43, %s2797_s13 }
0x2256   :  { %v2641_v45 = vpop.eup %2640 }
0x2257   :  { %v1625_v46 = vadd.f32 1.0, %v2641_v45 }
0x2259   :  { %2642 = vrcp.f32 %v1625_v46 }
0x2263   :  { %v2643_v47 = vpop.eup %2642 }
0x2264   :  { %v1632_v51 = vmul.f32 %v2643_v47, %v1630_v50 }
0x22c7   :  { %v1635_v48 = vpop.permute.xlu0 %1634 }
0x22c8   :  { %v1637_v49 = vmul.f32 %v2643_v47, %v1635_v48 }
0x22ca   :  { %1639 = vrot.lane.b32.xlu1 %v1637_v49, %s2798_s1 }
0x233c   :  { %v1640_v52 = vpop.permute.xlu1 %1639 }
0x233d   :  { %v1642_v53 = vadd.f32 %v1640_v52, %v1632_v51 }
0x233f   :  { %2644 = vtanh.f32 %v1642_v53 }
0x2349   :  { %v2645_v54 = vpop.eup %2644 }
0x234a   :  { %1645 = vrot.lane.b32.xlu0 %v2645_v54, %s2797_s13 }
0x23bc   :  { %v1646_v55 = vpop.permute.xlu0 %1645 }
0x23bd   :  { %v1648_v56 = vmul.f32 %v2643_v47, %v1646_v55 }
0x23bf   :  { %v1650_v57 = vrot.slane %v1648_v56, 4  ;;  %v1973_v18 = vsel %vm1024_vm5, %v1972_v37, %v1648_v56  ;;  %v1984_v56 = vld [vmem:[#allocation4] sm:$0x1] }
0x23c1   :  { %1651 = vrot.lane.b32.xlu1 %v1650_v57, %s2798_s1 }
0x2433   :  { %v1652_v58 = vpop.permute.xlu1 %1651 }
0x2434   :  { %2391 = vmatmul.mubr.msk.f32.vlgmr.msra.gmra.mrb[14].mxu1 %vm92_vm1, %v1652_v58 }
0x2435   :  { %2524 = vmatpush3.bf16.msra.mxu1 %v3026_v63  ;;  %2412 = vmatprep.mubr.msk.f32.mxu1 %vm2795_vm0, %v2796_v2 }
0x2436   :  { %2525 = vmatprep.subr.bf16.mxu1 %v2794_v1  ;;  %v1737_v1 = vrot.slane %v1642_v53, 7 }
0x2439   :  { %2527 = vmatpush3.bf16.msra.mxu1 %v3030_v6 }
0x2507   :  { %v1721_v59 = vpop.f32.mrb[14].mxu1 }
0x2508   :  { %v1726_v60 = vrot.slane %v1721_v59, 3  ;;  %v2392_v61 = vpop.f32.mrb[15].mxu1 }
0x2509   :  { %v1990_v61 = vlaneseq }
0x250a   :  { %v1728_v62 = vadd.f32 %v1726_v60, %v3056_v17  ;;  %v1982_v60 = vld [vmem:[%s3170_s5] sm:$0x1] }
0x250c   :  { %2646 = vtanh.f32 %v1728_v62  ;;  %v2118_v3 = vmul.f32 -1.442695, %v1728_v62  ;;  %v1991_v62 = vshrl.u32 %v1990_v61, 7 }
0x250e   :  { %2648 = vpow2.f32 %v2118_v3 }
0x2516   :  { %v2647_v0 = vpop.eup %2646 }
0x2517   :  { %1741 = vrot.lane.b32.xlu0 %v2647_v0, %s2797_s13  ;;  %v1992_v0 = vsub.s32 0, %v1991_v62 }
0x2518   :  { %v2649_v4 = vpop.eup %2648 }
0x2519   :  { %v1732_v63 = vadd.f32 1.0, %v2649_v4 }
0x251b   :  { %2650 = vrcp.f32 %v1732_v63 }
0x2525   :  { %v2651_v5 = vpop.eup %2650 }
0x2526   :  { %v1739_v6 = vmul.f32 %v2651_v5, %v1737_v1 }
0x2589   :  { %v1742_v10 = vpop.permute.xlu0 %1741 }
0x258a   :  { %v1744_v7 = vmul.f32 %v2651_v5, %v1742_v10 }
0x258c   :  { %1746 = vrot.lane.b32.xlu1 %v1744_v7, %s2798_s1 }
0x25fe   :  { %v1747_v8 = vpop.permute.xlu1 %1746 }
0x25ff   :  { %v1749_v9 = vadd.f32 %v1747_v8, %v1739_v6 }
0x2601   :  { %2652 = vtanh.f32 %v1749_v9 }
0x260b   :  { %v2653_v14 = vpop.eup %2652 }
0x260c   :  { %1752 = vrot.lane.b32.xlu0 %v2653_v14, %s2797_s13 }
0x267e   :  { %v1753_v11 = vpop.permute.xlu0 %1752 }
0x267f   :  { %v1755_v12 = vmul.f32 %v2651_v5, %v1753_v11 }
0x2681   :  { %v1757_v13 = vrot.slane %v1755_v12, 5  ;;  %v1974_v15 = vsel %vm1026_vm6, %v1973_v18, %v1755_v12  ;;  %v2799_v18 = vmov 0  }
0x2682   :  { %2541 = vset.pattern.permute.xlu0 %v2799_v18 }
0x2683   :  { %1758 = vrot.lane.b32.xlu1 %v1757_v13, %s2798_s1 }
0x26f5   :  { %v1759_v16 = vpop.permute.xlu1 %1758 }
0x26f6   :  { %2402 = vmatmul.mubr.msk.f32.vlgmr.msra.gmra.mrb[16].mxu0 %vm92_vm1, %v1759_v16 }
0x26f7   :  { %2417 = vmatprep.mubr.msk.f32.mxu0 %vm2795_vm0, %v2796_v2  ;;  %v1844_v2 = vrot.slane %v1749_v9, 7 }
0x27c9   :  { %v1828_v19 = vpop.f32.mrb[16].mxu0 }
0x27ca   :  { %v1833_v20 = vrot.slane %v1828_v19, 2  ;;  %v2403_v21 = vpop.f32.mrb[17].mxu0 }
0x27cc   :  { %v1835_v22 = vadd.f32 %v1833_v20, %v3056_v17 }
0x27ce   :  { %2654 = vtanh.f32 %v1835_v22  ;;  %v2120_v24 = vmul.f32 -1.442695, %v1835_v22 }
0x27d0   :  { %2656 = vpow2.f32 %v2120_v24 }
0x27d8   :  { %v2655_v23 = vpop.eup %2654 }
0x27d9   :  { %1848 = vrot.lane.b32.xlu0 %v2655_v23, %s2797_s13 }
0x27da   :  { %v2657_v25 = vpop.eup %2656 }
0x27db   :  { %v1839_v26 = vadd.f32 1.0, %v2657_v25 }
0x27dd   :  { %2658 = vrcp.f32 %v1839_v26 }
0x27e7   :  { %v2659_v27 = vpop.eup %2658 }
0x27e8   :  { %v1846_v30 = vmul.f32 %v2659_v27, %v1844_v2 }
0x284b   :  { %v1849_v28 = vpop.permute.xlu0 %1848 }
0x284c   :  { %v1851_v29 = vmul.f32 %v2659_v27, %v1849_v28 }
0x284e   :  { %1853 = vrot.lane.b32.xlu1 %v1851_v29, %s2798_s1 }
0x28c0   :  { %v1854_v31 = vpop.permute.xlu1 %1853 }
0x28c1   :  { %v1856_v32 = vadd.f32 %v1854_v31, %v1846_v30 }
0x28c3   :  { %2660 = vtanh.f32 %v1856_v32  ;;  %v1951_v50 = vrot.slane %v1856_v32, 7 }
0x28cd   :  { %v2661_v33 = vpop.eup %2660 }
0x28ce   :  { %1859 = vrot.lane.b32.xlu0 %v2661_v33, %s2797_s13 }
0x2940   :  { %v1860_v34 = vpop.permute.xlu0 %1859 }
0x2941   :  { %v1862_v35 = vmul.f32 %v2659_v27, %v1860_v34 }
0x2943   :  { %v1864_v36 = vrot.slane %v1862_v35, 6  ;;  %v1975_v37 = vsel %vm1028_vm7, %v1974_v15, %v1862_v35 }
0x2945   :  { %1865 = vrot.lane.b32.xlu1 %v1864_v36, %s2798_s1 }
0x29b7   :  { %v1866_v38 = vpop.permute.xlu1 %1865 }
0x29b8   :  { %2413 = vmatmul.mubr.msk.f32.vlgmr.msra.gmra.mrb[16].mxu1 %vm92_vm1, %v1866_v38 }
0x2a8b   :  { %v1935_v39 = vpop.f32.mrb[16].mxu1 }
0x2a8c   :  { %v1940_v40 = vrot.slane %v1935_v39, 1  ;;  %v2414_v41 = vpop.f32.mrb[17].mxu1 }
0x2a8e   :  { %v1942_v42 = vadd.f32 %v1940_v40, %v3056_v17 }
0x2a90   :  { %2662 = vtanh.f32 %v1942_v42  ;;  %v2122_v44 = vmul.f32 -1.442695, %v1942_v42 }
0x2a92   :  { %2664 = vpow2.f32 %v2122_v44 }
0x2a9a   :  { %v2663_v43 = vpop.eup %2662 }
0x2a9b   :  { %1955 = vrot.lane.b32.xlu0 %v2663_v43, %s2797_s13 }
0x2a9c   :  { %v2665_v45 = vpop.eup %2664 }
0x2a9d   :  { %v1946_v46 = vadd.f32 1.0, %v2665_v45 }
0x2a9f   :  { %2666 = vrcp.f32 %v1946_v46 }
0x2aa9   :  { %v2667_v47 = vpop.eup %2666 }
0x2aaa   :  { %v1953_v51 = vmul.f32 %v2667_v47, %v1951_v50 }
0x2b0d   :  { %v1956_v48 = vpop.permute.xlu0 %1955 }
0x2b0e   :  { %v1958_v49 = vmul.f32 %v2667_v47, %v1956_v48 }
0x2b10   :  { %1960 = vrot.lane.b32.xlu1 %v1958_v49, %s2798_s1 }
0x2b82   :  { %v1961_v52 = vpop.permute.xlu1 %1960 }
0x2b83   :  { %v1963_v53 = vadd.f32 %v1961_v52, %v1953_v51 }
0x2b85   :  { %2668 = vtanh.f32 %v1963_v53 }
0x2b8f   :  { %v2669_v17 = vpop.eup %2668 }
0x2b90   :  { %1966 = vrot.lane.b32.xlu0 %v2669_v17, %s2797_s13 }
0x2b94   :  { %1987 = vperm.xlu0 %2541, %v1984_v56  }
0x2c02   :  { %v1967_v54 = vpop.permute.xlu0 %1966 }
0x2c03   :  { %v1969_v55 = vmul.f32 %v2667_v47, %v1967_v54 }
0x2c05   :  { %v1976_v57 = vsel %vm1030_vm8, %v1975_v37, %v1969_v55 }
0x2c06   :  { %1978 = vrot.lane.b32.xlu1 %v1976_v57, %s2798_s1 }
0x2c13   :  { %v1988_v3 = vpop.permute.xlu0 %1987 }
0x2c14   :  { %v1993_v4 = vrot.slane %v1988_v3, %v1992_v0 }
0x2c78   :  { %v1979_v58 = vpop.permute.xlu1 %1978 }
0x2c79   :  { %1981 = vst.msk [vmem:[#allocation2] sm:$0xff] %vm92_vm1, %v1979_v58 }
0x2c80   :  { %v1983_v59 = vld [vmem:[#allocation2] sm:$0xff] }
0x2c81   :  { %2416 = vmatpush3.xpose.msk.msra.mxu0 %vm92_vm1, %v1983_v59 }
0x2c84   :  { %2418 = vmatmul.mubr.msk.f32.vlgmr.msra.gmra.mrb[18].mxu0 %vm92_vm1, %v1982_v60 }
0x2d57   :  { %v2066_v63 = vpop.f32.mrb[18].mxu0 }
0x2d58   :  { %v2067_v5 = vadd.f32 %v2066_v63, %v1993_v4  ;;  %v2419_v10 = vpop.f32.mrb[19].mxu0 }
0x2d5a   :  { %2071 = vst.msk [vmem:[#allocation13] sm:$0x1] %vm2070_vm9, %v2067_v5 }
0x2d5b   :  { %2769 = shalt.err (!%p2766_p8)
}
0x2d5c   :  { %s2770_s6 = scalar_lea.hbm %s3172_s7, 16 }
0x2d5d   :  { %p2771_p9 = scmp.ne.s32.totalorder %s3172_s7, %s2770_s6  ;;  %p2774_p10 = scmp.lt.u32.totalorder %s2770_s6, %s3172_s7 }
0x2d5f   :  { %p2776_p11 = pnand %p2774_p10, %p2771_p9 }
0x2d61   :  { %2779 = shalt.err (!%p2776_p11)
}
0x2d62   :  { %2081 = dma.vmem_to_hbm [thread:$0]  %s2079_s8, 16, %s3172_s7, [#allocation7]  }
0x2d63   :  { %2786 = dma.done.wait [#allocation7], 16  }
0x2d64   :  { %2787 = vsyncadd [#allocation7], 4294967280 }
0x2d65   :  { %2085 = vsyncpa [#allocation6], 1 }
0x2d66   :  { %2086 = vsyncpa [#allocation9], 1 }
0x2d67   :  { %2087 = vsyncpa [#allocation12], 1 }
0x2d68   :  { %2088 = vsyncpa [#allocation7], 1 }

</bundles_post_ra>
